<compile_context>
chip_gen: v6e
topology: v6e:2x2x1
jax: 0.10.0
libtpu: 0.0.40
codegen_flags: <defaults>
</compile_context>

<pallas_src>
import functools
import math

import jax
import jax.numpy as jnp
from jax import lax
from jax.experimental import pallas as pl
from jax.experimental.pallas import tpu as pltpu


# --------------------------------------------------------------------------
# Per-generation VMEM budget and tile-size helpers.
# --------------------------------------------------------------------------
def _vmem_budget_bytes():
    cap = 128 * 1024 * 1024
    try:
        info = pltpu.get_tpu_info()
        cap = int(getattr(info, "vmem_capacity_bytes", cap))
    except Exception:
        pass
    # Leave ~1/4 headroom for compiler scratch, semaphores and spill slots
    # (critical on v7x's 64 MiB; gives ~96 MiB on v5e/v6e).
    return (cap * 3) // 4


_VMEM_BUDGET = _vmem_budget_bytes()
_BIG_VMEM = _VMEM_BUDGET >= 80 * 1024 * 1024


def _row_tile(n):
    cap = 512 if _BIG_VMEM else 256
    if n <= cap:
        return n
    t = (cap // 8) * 8
    while t >= 8:
        if n % t == 0:
            return t
        t -= 8
    return n


def _lane_tile(dim, cap):
    """Largest multiple of 128 <= cap that divides dim (or dim itself)."""
    if dim <= cap:
        return dim
    t = (cap // 128) * 128
    while t >= 128:
        if dim % t == 0:
            return t
        t -= 128
    return dim


def _layernorm(x, gamma, beta, eps=1e-5):
    mu = jnp.mean(x, axis=-1, keepdims=True)
    xc = x - mu
    var = jnp.mean(xc * xc, axis=-1, keepdims=True)
    return xc * lax.rsqrt(var + eps) * gamma + beta


def _gelu_exact(x):
    # nn.GELU() default (approximate='none')
    return 0.5 * x * (1.0 + lax.erf(x / math.sqrt(2.0)))


# --------------------------------------------------------------------------
# Kernel 1: LN1 + fused Q/K/V projections, grid = (row tiles, E col tiles).
# Weights are streamed column-tile by column-tile (never fully resident).
# Outputs q/k/v in bf16.
# --------------------------------------------------------------------------
def qkv_kernel(x_ref, g_ref, b_ref, wq_ref, bq_ref, wk_ref, bk_ref,
               wv_ref, bv_ref, q_ref, k_ref, v_ref):
    h = _layernorm(x_ref[...], g_ref[...], b_ref[...]).astype(jnp.bfloat16)
    q_ref[...] = (jnp.dot(h, wq_ref[...], preferred_element_type=jnp.float32)
                  + bq_ref[...]).astype(jnp.bfloat16)
    k_ref[...] = (jnp.dot(h, wk_ref[...], preferred_element_type=jnp.float32)
                  + bk_ref[...]).astype(jnp.bfloat16)
    v_ref[...] = (jnp.dot(h, wv_ref[...], preferred_element_type=jnp.float32)
                  + bv_ref[...]).astype(jnp.bfloat16)


def run_qkv(x2d, p):
    N, E = x2d.shape
    tm = _row_tile(N)
    tc = _lane_tile(E, 512)
    row_res = pl.BlockSpec((tm, E), lambda i, c: (i, 0))
    col_w = pl.BlockSpec((E, tc), lambda i, c: (0, c))
    col_b = pl.BlockSpec((1, tc), lambda i, c: (0, c))
    const = lambda shape: pl.BlockSpec(shape, lambda i, c: (0, 0))
    out_spec = pl.BlockSpec((tm, tc), lambda i, c: (i, c))
    out_sd = jax.ShapeDtypeStruct((N, E), jnp.bfloat16)
    return pl.pallas_call(
        qkv_kernel,
        out_shape=(out_sd, out_sd, out_sd),
        grid=(N // tm, E // tc),
        in_specs=[row_res, const((1, E)), const((1, E)),
                  col_w, col_b, col_w, col_b, col_w, col_b],
        out_specs=(out_spec, out_spec, out_spec),
        compiler_params=pltpu.CompilerParams(
            dimension_semantics=("parallel", "parallel"),
            vmem_limit_bytes=_VMEM_BUDGET),
    )(x2d, p['ln1_g'], p['ln1_b'],
      p['wq_f'], p['bq_f'], p['wk_f'], p['bk_f'], p['wv_f'], p['bv_f'])


# --------------------------------------------------------------------------
# Kernel 2: per-head causal softmax attention, grid = (batch, query tiles).
# Per-head contexts are written into a VMEM scratch as they are computed
# (bounded live ranges) and stored once, lane-dense, in bf16.  Per-(b,qi)
# per-head sums of row L2-norms are emitted for the global head-norm denom.
# --------------------------------------------------------------------------
def attention_kernel(q_ref, k_ref, v_ref, o_ref, norm_ref, acc_ref,
                     *, num_heads, head_dim):
    qi = pl.program_id(1)
    q = q_ref[0]                       # [tq, E] bf16
    k = k_ref[0]                       # [T,  E] bf16
    v = v_ref[0]
    tq = q.shape[0]
    T = k.shape[0]
    scale = 1.0 / math.sqrt(head_dim)

    # Additive causal mask built in-kernel with the global query-row offset.
    row = lax.broadcasted_iota(jnp.int32, (tq, T), 0) + qi * tq
    col = lax.broadcasted_iota(jnp.int32, (tq, T), 1)
    mask = jnp.where(col <= row, 0.0, -10000.0).astype(jnp.float32)

    norm_parts = []
    # TODO(synk): lax.fori_loop over heads + online-softmax KV tiling for very
    # large H / very long T; the static loop with a scratch accumulator keeps
    # only one [tq,T] score matrix and one [tq,hd] context live at a time.
    for i in range(num_heads):
        s0 = i * head_dim
        qh = q[:, s0:s0 + head_dim]
        kh = k[:, s0:s0 + head_dim]
        vh = v[:, s0:s0 + head_dim]
        scores = jnp.einsum('qd,kd->qk', qh, kh,
                            preferred_element_type=jnp.float32) * scale + mask
        m = jnp.max(scores, axis=-1, keepdims=True)
        e = jnp.exp(scores - m)
        w = e * pl.reciprocal(jnp.sum(e, axis=-1, keepdims=True), approx=True)
        ctx = jnp.dot(w.astype(jnp.bfloat16), vh,
                      preferred_element_type=jnp.float32)        # [tq, hd] f32
        acc_ref[:, s0:s0 + head_dim] = ctx
        nrm = jnp.sqrt(jnp.sum(ctx * ctx, axis=-1, keepdims=True))  # [tq, 1]
        norm_parts.append(jnp.sum(nrm, axis=0, keepdims=True))      # [1, 1]

    o_ref[0] = acc_ref[...].astype(jnp.bfloat16)                    # lane-dense store
    # TODO(synk): could accumulate norms across (B, qtiles) in-kernel to shave
    # the tiny per-layer glue reduction; kept as a small [B,nq,H] output here.
    norm_ref[0] = jnp.concatenate(norm_parts, axis=-1)               # [1, H]


def run_attention(q, k, v, num_heads, head_dim):
    B, T, E = q.shape
    tq = T if (T <= 256 or T % 256 != 0) else 256
    nq = T // tq
    kernel = functools.partial(attention_kernel,
                               num_heads=num_heads, head_dim=head_dim)
    return pl.pallas_call(
        kernel,
        out_shape=(jax.ShapeDtypeStruct((B, T, E), jnp.bfloat16),
                   jax.ShapeDtypeStruct((B, nq, num_heads), jnp.float32)),
        grid=(B, nq),
        in_specs=[pl.BlockSpec((1, tq, E), lambda b, i: (b, i, 0)),
                  pl.BlockSpec((1, T, E), lambda b, i: (b, 0, 0)),
                  pl.BlockSpec((1, T, E), lambda b, i: (b, 0, 0))],
        out_specs=(pl.BlockSpec((1, tq, E), lambda b, i: (b, i, 0)),
                   pl.BlockSpec((1, 1, num_heads), lambda b, i: (b, i, 0))),
        scratch_shapes=[pltpu.VMEM((tq, E), jnp.float32)],
        compiler_params=pltpu.CompilerParams(
            dimension_semantics=("parallel", "parallel"),
            vmem_limit_bytes=_VMEM_BUDGET),
    )(q, k, v)


# --------------------------------------------------------------------------
# Kernel 3: attention output projection (gated per-head scale & bias folded
# in) + residual.  Grid = (row tiles, E col tiles); W_o is streamed.
# --------------------------------------------------------------------------
def oproj_kernel(x_ref, o_ref, scale_ref, wo_ref, bo_ref, y_ref):
    o = o_ref[...].astype(jnp.float32) * scale_ref[...]     # per-head scale folded
    y_ref[...] = (x_ref[...]
                  + jnp.dot(o.astype(jnp.bfloat16), wo_ref[...],
                            preferred_element_type=jnp.float32)
                  + bo_ref[...])


def run_oproj(x2d, o2d, scale_vec, p):
    N, E = x2d.shape
    tm = _row_tile(N)
    tc = _lane_tile(E, 512)
    return pl.pallas_call(
        oproj_kernel,
        out_shape=jax.ShapeDtypeStruct((N, E), jnp.float32),
        grid=(N // tm, E // tc),
        in_specs=[pl.BlockSpec((tm, tc), lambda i, c: (i, c)),
                  pl.BlockSpec((tm, E), lambda i, c: (i, 0)),
                  pl.BlockSpec((1, E), lambda i, c: (0, 0)),
                  pl.BlockSpec((E, tc), lambda i, c: (0, c)),
                  pl.BlockSpec((1, tc), lambda i, c: (0, c))],
        out_specs=pl.BlockSpec((tm, tc), lambda i, c: (i, c)),
        compiler_params=pltpu.CompilerParams(
            dimension_semantics=("parallel", "parallel"),
            vmem_limit_bytes=_VMEM_BUDGET),
    )(x2d, o2d, scale_vec, p['wo_f'], p['bo_comb'])


# --------------------------------------------------------------------------
# Kernel 4: LN2 + FFN + residual.  Grid = (row tiles, F tiles) with the F
# axis as a trailing 'arbitrary' reduction: W1/W2 tiles are streamed and the
# partial W2 products accumulate into a VMEM scratch (pl.when init/finalize).
# --------------------------------------------------------------------------
def ffn_kernel(y_ref, g_ref, b_ref, w1_ref, b1_ref, w2_ref, b2_ref, out_ref,
               h2_ref, acc_ref):
    f = pl.program_id(1)

    @pl.when(f == 0)
    def _():
        h2_ref[...] = _layernorm(y_ref[...], g_ref[...],
                                 b_ref[...]).astype(jnp.bfloat16)
        acc_ref[...] = jnp.zeros_like(acc_ref)

    hid = _gelu_exact(jnp.dot(h2_ref[...], w1_ref[...],
                              preferred_element_type=jnp.float32) + b1_ref[...])
    acc_ref[...] += jnp.dot(hid.astype(jnp.bfloat16), w2_ref[...],
                            preferred_element_type=jnp.float32)

    @pl.when(f == pl.num_programs(1) - 1)
    def _():
        out_ref[...] = y_ref[...] + acc_ref[...] + b2_ref[...]


def run_ffn(y2d, p):
    N, E = y2d.shape
    F = p['w1_f'].shape[1]
    tm = _row_tile(N)
    tf = _lane_tile(F, 1024 if _BIG_VMEM else 512)
    return pl.pallas_call(
        ffn_kernel,
        out_shape=jax.ShapeDtypeStruct((N, E), jnp.float32),
        grid=(N // tm, F // tf),
        in_specs=[pl.BlockSpec((tm, E), lambda i, f: (i, 0)),
                  pl.BlockSpec((1, E), lambda i, f: (0, 0)),
                  pl.BlockSpec((1, E), lambda i, f: (0, 0)),
                  pl.BlockSpec((E, tf), lambda i, f: (0, f)),
                  pl.BlockSpec((1, tf), lambda i, f: (0, f)),
                  pl.BlockSpec((tf, E), lambda i, f: (f, 0)),
                  pl.BlockSpec((1, E), lambda i, f: (0, 0))],
        out_specs=pl.BlockSpec((tm, E), lambda i, f: (i, 0)),
        scratch_shapes=[pltpu.VMEM((tm, E), jnp.bfloat16),
                        pltpu.VMEM((tm, E), jnp.float32)],
        compiler_params=pltpu.CompilerParams(
            dimension_semantics=("parallel", "arbitrary"),
            vmem_limit_bytes=_VMEM_BUDGET),
    )(y2d, p['ln2_g'], p['ln2_b'], p['w1_f'], p['b1'], p['w2_f'], p['b2'])


# --------------------------------------------------------------------------
# Kernel 5: final LayerNorm + tied LM head, tiled over (rows, vocab).
# The bf16 tied weight is streamed lane-dense, vocab is the inner grid axis
# so the row tile stays resident.
# --------------------------------------------------------------------------
def lm_head_kernel(x_ref, g_ref, b_ref, w_ref, out_ref):
    h = _layernorm(x_ref[...], g_ref[...], b_ref[...]).astype(jnp.bfloat16)
    out_ref[...] = jnp.dot(h, w_ref[...], preferred_element_type=jnp.float32)


def run_lm_head(x2d, g, b, wte_t):
    N, E = x2d.shape
    V = wte_t.shape[1]
    tm = _row_tile(N)
    tn = _lane_tile(V, 2048 if _BIG_VMEM else 1024)
    return pl.pallas_call(
        lm_head_kernel,
        out_shape=jax.ShapeDtypeStruct((N, V), jnp.float32),
        grid=(N // tm, V // tn),
        in_specs=[pl.BlockSpec((tm, E), lambda i, j: (i, 0)),
                  pl.BlockSpec((1, E), lambda i, j: (0, 0)),
                  pl.BlockSpec((1, E), lambda i, j: (0, 0)),
                  pl.BlockSpec((E, tn), lambda i, j: (0, j))],
        out_specs=pl.BlockSpec((tm, tn), lambda i, j: (i, j)),
        compiler_params=pltpu.CompilerParams(
            dimension_semantics=("parallel", "parallel"),
            vmem_limit_bytes=_VMEM_BUDGET),
    )(x2d, g, b, wte_t)


# --------------------------------------------------------------------------
# Parameter preparation (fused bf16 layouts) and forward pass.
# --------------------------------------------------------------------------
def prepare_params(params, num_heads, head_dim):
    """Build fused / bf16 weight layouts used by the kernels (done once)."""
    E = num_heads * head_dim
    bf16 = jnp.bfloat16
    blocks = []
    for p in params['blocks']:
        wq = jnp.transpose(p['wq_t'], (1, 0, 2)).reshape(E, E)   # [E, H*hd]
        wk = jnp.transpose(p['wk_t'], (1, 0, 2)).reshape(E, E)
        wv = jnp.transpose(p['wv_t'], (1, 0, 2)).reshape(E, E)
        gate_c = jnp.clip(p['gate'], 0.0, 1.0)
        bo_comb = (gate_c[:, None] * p['bo']).sum(axis=0,
                                                  keepdims=True) / num_heads
        blocks.append(dict(
            ln1_g=p['ln1_g'], ln1_b=p['ln1_b'],
            wq_f=wq.astype(bf16), wk_f=wk.astype(bf16), wv_f=wv.astype(bf16),
            bq_f=p['bq'].reshape(1, E), bk_f=p['bk'].reshape(1, E),
            bv_f=p['bv'].reshape(1, E),
            wo_f=p['wo_t'].reshape(E, E).astype(bf16),
            bo_comb=bo_comb, gate=p['gate'],
            ln2_g=p['ln2_g'], ln2_b=p['ln2_b'],
            w1_f=p['w1_t'].astype(bf16), b1=p['b1'],
            w2_f=p['w2_t'].astype(bf16), b2=p['b2']))
    return dict(wte=params['wte'],
                wte_t=params['wte'].T.astype(bf16),   # tied lm-head, pre-transposed bf16
                wpe=params['wpe'], blocks=blocks,
                lnf_g=params['lnf_g'], lnf_b=params['lnf_b'])


def forward(prepared, input_ids, num_heads, head_dim):
    B, T = input_ids.shape
    E = num_heads * head_dim
    N = B * T
    # TODO(synk): embedding gather stays in plain JAX glue (tiny, not hot path).
    x = prepared['wte'][input_ids] + prepared['wpe'][jnp.arange(T)][None, :, :]
    x2d = x.astype(jnp.float32).reshape(N, E)

    for p in prepared['blocks']:
        q, k, v = run_qkv(x2d, p)                                   # bf16 [N,E]
        o, norms = run_attention(q.reshape(B, T, E), k.reshape(B, T, E),
                                 v.reshape(B, T, E), num_heads, head_dim)
        # Per-head normalization denominator: max(mean(||ctx||_2 over B,T), 1e-5).
        denom = jnp.maximum(jnp.sum(norms, axis=(0, 1)) / (B * T), 1e-5)  # [H]
        scale_h = jnp.clip(p['gate'], 0.0, 1.0) / (num_heads * denom)     # [H]
        scale_vec = jnp.repeat(scale_h, head_dim)[None, :]                # [1, E]
        y2d = run_oproj(x2d, o.reshape(N, E), scale_vec, p)               # f32
        x2d = run_ffn(y2d, p)                                             # f32

    logits2d = run_lm_head(x2d, prepared['lnf_g'], prepared['lnf_b'],
                           prepared['wte_t'])
    return logits2d.reshape(B, T, -1)


# --------------------------------------------------------------------------
# Pure-JAX f32 reference (mirrors the PyTorch eval-mode forward) and init.
# --------------------------------------------------------------------------
def reference_forward(params, input_ids, num_heads, head_dim):
    B, T = input_ids.shape
    x = params['wte'][input_ids] + params['wpe'][jnp.arange(T)][None]
    mask = (1.0 - jnp.tril(jnp.ones((T, T), jnp.float32))) * -10000.0
    scale = 1.0 / math.sqrt(head_dim)
    for p in params['blocks']:
        h = _layernorm(x, p['ln1_g'], p['ln1_b'])
        acc = jnp.zeros_like(x)
        for i in range(num_heads):
            q = h @ p['wq_t'][i] + p['bq'][i]
            k = h @ p['wk_t'][i] + p['bk'][i]
            v = h @ p['wv_t'][i] + p['bv'][i]
            s = jnp.einsum('bqd,bkd->bqk', q, k) * scale + mask
            w = jax.nn.softmax(s, axis=-1)
            o = jnp.einsum('bqk,bkd->bqd', w, v)
            denom = jnp.maximum(jnp.mean(jnp.linalg.norm(o, axis=-1)), 1e-5)
            o_n = o / denom
            g = jnp.clip(p['gate'][i], 0.0, 1.0)
            acc = acc + (o_n @ p['wo_t'][i] + p['bo'][i]) * g
        x = x + acc / num_heads
        h2 = _layernorm(x, p['ln2_g'], p['ln2_b'])
        hid = jax.nn.gelu(h2 @ p['w1_t'] + p['b1'], approximate=False)
        x = x + hid @ p['w2_t'] + p['b2']
    h = _layernorm(x, params['lnf_g'], params['lnf_b'])
    return h @ params['wte'].T


def init_params(key, vocab, max_pos, E, H, L, F):
    hd = E // H
    ks = jax.random.split(key, 2 + L)
    wte = 0.02 * jax.random.normal(ks[0], (vocab, E), jnp.float32)
    wpe = 0.02 * jax.random.normal(ks[1], (max_pos, E), jnp.float32)
    blocks = []
    for li in range(L):
        k = jax.random.split(ks[2 + li], 6)
        blocks.append(dict(
            ln1_g=jnp.ones((1, E), jnp.float32), ln1_b=jnp.zeros((1, E), jnp.float32),
            wq_t=0.02 * jax.random.normal(k[0], (H, E, hd), jnp.float32),
            bq=jnp.zeros((H, hd), jnp.float32),
            wk_t=0.02 * jax.random.normal(k[1], (H, E, hd), jnp.float32),
            bk=jnp.zeros((H, hd), jnp.float32),
            wv_t=0.02 * jax.random.normal(k[2], (H, E, hd), jnp.float32),
            bv=jnp.zeros((H, hd), jnp.float32),
            wo_t=0.02 * jax.random.normal(k[3], (H, hd, E), jnp.float32),
            bo=jnp.zeros((H, E), jnp.float32),
            gate=jnp.ones((H,), jnp.float32),
            ln2_g=jnp.ones((1, E), jnp.float32), ln2_b=jnp.zeros((1, E), jnp.float32),
            w1_t=0.02 * jax.random.normal(k[4], (E, F), jnp.float32),
            b1=jnp.zeros((1, F), jnp.float32),
            w2_t=0.02 * jax.random.normal(k[5], (F, E), jnp.float32),
            b2=jnp.zeros((1, E), jnp.float32),
        ))
    return dict(wte=wte, wpe=wpe, blocks=blocks,
                lnf_g=jnp.ones((1, E), jnp.float32),
                lnf_b=jnp.zeros((1, E), jnp.float32))


if __name__ == "__main__":
    B, T = 2, 8
    E, H, L = 32, 4, 2
    vocab, max_pos = 64, 16
    F = 4 * E
    hd = E // H

    key = jax.random.PRNGKey(0)
    pkey, ikey = jax.random.split(key)
    params = init_params(pkey, vocab, max_pos, E, H, L, F)
    prepared = prepare_params(params, H, hd)
    input_ids = jax.random.randint(ikey, (B, T), 0, vocab)

    fwd = jax.jit(lambda p, ids: forward(p, ids, H, hd))
    logits = jax.block_until_ready(fwd(prepared, input_ids))

    assert logits.shape == (B, T, vocab)
    ref = reference_forward(params, input_ids, H, hd)
    max_err = float(jnp.max(jnp.abs(logits - ref)))
    # bf16 MXU operands + approx reciprocal => relaxed tolerance vs. the f32
    # reference (observed error is ~1e-3 at these scales).
    assert max_err < 5e-2, max_err

    print("KERNEL_OK")
</pallas_src>

<mosaic_0001>
module attributes {stable_mosaic.version = 11 : i64} {
  func.func @qkv_kernel(%arg0: i32, %arg1: i32, %arg2: memref<16x32xf32, #tpu.memory_space<vmem>>, %arg3: memref<1x32xf32, #tpu.memory_space<vmem>>, %arg4: memref<1x32xf32, #tpu.memory_space<vmem>>, %arg5: memref<32x32xbf16, #tpu.memory_space<vmem>>, %arg6: memref<1x32xf32, #tpu.memory_space<vmem>>, %arg7: memref<32x32xbf16, #tpu.memory_space<vmem>>, %arg8: memref<1x32xf32, #tpu.memory_space<vmem>>, %arg9: memref<32x32xbf16, #tpu.memory_space<vmem>>, %arg10: memref<1x32xf32, #tpu.memory_space<vmem>>, %arg11: memref<16x32xbf16, #tpu.memory_space<vmem>>, %arg12: memref<16x32xbf16, #tpu.memory_space<vmem>>, %arg13: memref<16x32xbf16, #tpu.memory_space<vmem>>) attributes {dimension_semantics = [#tpu.dimension_semantics<parallel>, #tpu.dimension_semantics<parallel>], iteration_bounds = array<i64: 1, 1>, scalar_prefetch = 0 : i64, scratch_operands = 0 : i64, tpu.core_type = #tpu.core_type<tc>, window_params = [{transform_indices = @transform_0, window_bounds = array<i64: 16, 32>}, {pipeline_mode = #tpu.pipeline_mode<synchronous>, transform_indices = @transform_1, window_bounds = array<i64: 1, 32>}, {pipeline_mode = #tpu.pipeline_mode<synchronous>, transform_indices = @transform_2, window_bounds = array<i64: 1, 32>}, {transform_indices = @transform_3, window_bounds = array<i64: 32, 32>}, {transform_indices = @transform_4, window_bounds = array<i64: 1, 32>}, {transform_indices = @transform_5, window_bounds = array<i64: 32, 32>}, {transform_indices = @transform_6, window_bounds = array<i64: 1, 32>}, {transform_indices = @transform_7, window_bounds = array<i64: 32, 32>}, {transform_indices = @transform_8, window_bounds = array<i64: 1, 32>}, {transform_indices = @transform_9, window_bounds = array<i64: 16, 32>}, {transform_indices = @transform_10, window_bounds = array<i64: 16, 32>}, {transform_indices = @transform_11, window_bounds = array<i64: 16, 32>}]} {
    %c0 = arith.constant 0 : index
    %c0_0 = arith.constant 0 : index
    %0 = vector.load %arg2[%c0, %c0_0] : memref<16x32xf32, #tpu.memory_space<vmem>>, vector<16x32xf32>
    %c0_1 = arith.constant 0 : index
    %c0_2 = arith.constant 0 : index
    %1 = vector.load %arg3[%c0_1, %c0_2] : memref<1x32xf32, #tpu.memory_space<vmem>>, vector<1x32xf32>
    %c0_3 = arith.constant 0 : index
    %c0_4 = arith.constant 0 : index
    %2 = vector.load %arg4[%c0_3, %c0_4] : memref<1x32xf32, #tpu.memory_space<vmem>>, vector<1x32xf32>
    %cst = arith.constant dense<0.000000e+00> : vector<16xf32>
    %3 = vector.multi_reduction <add>, %0, %cst [1] : vector<16x32xf32> to vector<16xf32>
    %4 = vector.shape_cast %3 : vector<16xf32> to vector<16x1xf32>
    %cst_5 = arith.constant 3.200000e+01 : f32
    %5 = vector.broadcast %cst_5 : f32 to vector<16x1xf32>
    %6 = arith.divf %4, %5 : vector<16x1xf32>
    %7 = vector.broadcast %6 : vector<16x1xf32> to vector<16x32xf32>
    %8 = arith.subf %0, %7 : vector<16x32xf32>
    %9 = arith.mulf %8, %8 : vector<16x32xf32>
    %cst_6 = arith.constant dense<0.000000e+00> : vector<16xf32>
    %10 = vector.multi_reduction <add>, %9, %cst_6 [1] : vector<16x32xf32> to vector<16xf32>
    %11 = vector.shape_cast %10 : vector<16xf32> to vector<16x1xf32>
    %cst_7 = arith.constant 3.200000e+01 : f32
    %12 = vector.broadcast %cst_7 : f32 to vector<16x1xf32>
    %13 = arith.divf %11, %12 : vector<16x1xf32>
    %cst_8 = arith.constant 9.99999974E-6 : f32
    %14 = vector.broadcast %cst_8 : f32 to vector<16x1xf32>
    %15 = arith.addf %13, %14 : vector<16x1xf32>
    %16 = math.rsqrt %15 : vector<16x1xf32>
    %17 = vector.broadcast %16 : vector<16x1xf32> to vector<16x32xf32>
    %18 = arith.mulf %8, %17 : vector<16x32xf32>
    %19 = vector.broadcast %1 : vector<1x32xf32> to vector<16x32xf32>
    %20 = arith.mulf %18, %19 : vector<16x32xf32>
    %21 = vector.broadcast %2 : vector<1x32xf32> to vector<16x32xf32>
    %22 = arith.addf %20, %21 : vector<16x32xf32>
    %23 = arith.truncf %22 : vector<16x32xf32> to vector<16x32xbf16>
    %c0_9 = arith.constant 0 : index
    %c0_10 = arith.constant 0 : index
    %24 = vector.load %arg5[%c0_9, %c0_10] : memref<32x32xbf16, #tpu.memory_space<vmem>>, vector<32x32xbf16>
    %cst_11 = arith.constant dense<0.000000e+00> : vector<16x32xf32>
    %25 = tpu.matmul %23, %24, %cst_11 {dimension_numbers = #tpu.dot_dimension_numbers<[1], [0], [0], [1], [0, 0, 1, 1], [], []>} : vector<16x32xbf16>, vector<32x32xbf16>, vector<16x32xf32> -> vector<16x32xf32>
    %c0_12 = arith.constant 0 : index
    %c0_13 = arith.constant 0 : index
    %26 = vector.load %arg6[%c0_12, %c0_13] : memref<1x32xf32, #tpu.memory_space<vmem>>, vector<1x32xf32>
    %27 = vector.broadcast %26 : vector<1x32xf32> to vector<16x32xf32>
    %28 = arith.addf %25, %27 : vector<16x32xf32>
    %29 = arith.truncf %28 : vector<16x32xf32> to vector<16x32xbf16>
    %c0_14 = arith.constant 0 : index
    %c0_15 = arith.constant 0 : index
    %30 = vector.load %arg11[%c0_14, %c0_15] : memref<16x32xbf16, #tpu.memory_space<vmem>>, vector<16x32xbf16>
    tpu.vector_store %arg11[%c0_14, %c0_15], %29 {strides = array<i32>} : memref<16x32xbf16, #tpu.memory_space<vmem>>, vector<16x32xbf16>,
    %c0_16 = arith.constant 0 : index
    %c0_17 = arith.constant 0 : index
    %31 = vector.load %arg7[%c0_16, %c0_17] : memref<32x32xbf16, #tpu.memory_space<vmem>>, vector<32x32xbf16>
    %cst_18 = arith.constant dense<0.000000e+00> : vector<16x32xf32>
    %32 = tpu.matmul %23, %31, %cst_18 {dimension_numbers = #tpu.dot_dimension_numbers<[1], [0], [0], [1], [0, 0, 1, 1], [], []>} : vector<16x32xbf16>, vector<32x32xbf16>, vector<16x32xf32> -> vector<16x32xf32>
    %c0_19 = arith.constant 0 : index
    %c0_20 = arith.constant 0 : index
    %33 = vector.load %arg8[%c0_19, %c0_20] : memref<1x32xf32, #tpu.memory_space<vmem>>, vector<1x32xf32>
    %34 = vector.broadcast %33 : vector<1x32xf32> to vector<16x32xf32>
    %35 = arith.addf %32, %34 : vector<16x32xf32>
    %36 = arith.truncf %35 : vector<16x32xf32> to vector<16x32xbf16>
    %c0_21 = arith.constant 0 : index
    %c0_22 = arith.constant 0 : index
    %37 = vector.load %arg12[%c0_21, %c0_22] : memref<16x32xbf16, #tpu.memory_space<vmem>>, vector<16x32xbf16>
    tpu.vector_store %arg12[%c0_21, %c0_22], %36 {strides = array<i32>} : memref<16x32xbf16, #tpu.memory_space<vmem>>, vector<16x32xbf16>,
    %c0_23 = arith.constant 0 : index
    %c0_24 = arith.constant 0 : index
    %38 = vector.load %arg9[%c0_23, %c0_24] : memref<32x32xbf16, #tpu.memory_space<vmem>>, vector<32x32xbf16>
    %cst_25 = arith.constant dense<0.000000e+00> : vector<16x32xf32>
    %39 = tpu.matmul %23, %38, %cst_25 {dimension_numbers = #tpu.dot_dimension_numbers<[1], [0], [0], [1], [0, 0, 1, 1], [], []>} : vector<16x32xbf16>, vector<32x32xbf16>, vector<16x32xf32> -> vector<16x32xf32>
    %c0_26 = arith.constant 0 : index
    %c0_27 = arith.constant 0 : index
    %40 = vector.load %arg10[%c0_26, %c0_27] : memref<1x32xf32, #tpu.memory_space<vmem>>, vector<1x32xf32>
    %41 = vector.broadcast %40 : vector<1x32xf32> to vector<16x32xf32>
    %42 = arith.addf %39, %41 : vector<16x32xf32>
    %43 = arith.truncf %42 : vector<16x32xf32> to vector<16x32xbf16>
    %c0_28 = arith.constant 0 : index
    %c0_29 = arith.constant 0 : index
    %44 = vector.load %arg13[%c0_28, %c0_29] : memref<16x32xbf16, #tpu.memory_space<vmem>>, vector<16x32xbf16>
    tpu.vector_store %arg13[%c0_28, %c0_29], %43 {strides = array<i32>} : memref<16x32xbf16, #tpu.memory_space<vmem>>, vector<16x32xbf16>,
    return
  }
  func.func @transform_0(%arg0: i32, %arg1: i32) -> (i32, i32) {
    %c0_i32 = arith.constant 0 : i32
    %c0_i32_0 = arith.constant 0 : i32
    return %arg0, %c0_i32 : i32, i32
  }
  func.func @transform_1(%arg0: i32, %arg1: i32) -> (i32, i32) {
    %c0_i32 = arith.constant 0 : i32
    %c0_i32_0 = arith.constant 0 : i32
    %c0_i32_1 = arith.constant 0 : i32
    return %c0_i32, %c0_i32_0 : i32, i32
  }
  func.func @transform_2(%arg0: i32, %arg1: i32) -> (i32, i32) {
    %c0_i32 = arith.constant 0 : i32
    %c0_i32_0 = arith.constant 0 : i32
    %c0_i32_1 = arith.constant 0 : i32
    return %c0_i32, %c0_i32_0 : i32, i32
  }
  func.func @transform_3(%arg0: i32, %arg1: i32) -> (i32, i32) {
    %c0_i32 = arith.constant 0 : i32
    %c0_i32_0 = arith.constant 0 : i32
    return %c0_i32, %arg1 : i32, i32
  }
  func.func @transform_4(%arg0: i32, %arg1: i32) -> (i32, i32) {
    %c0_i32 = arith.constant 0 : i32
    %c0_i32_0 = arith.constant 0 : i32
    return %c0_i32, %arg1 : i32, i32
  }
  func.func @transform_5(%arg0: i32, %arg1: i32) -> (i32, i32) {
    %c0_i32 = arith.constant 0 : i32
    %c0_i32_0 = arith.constant 0 : i32
    return %c0_i32, %arg1 : i32, i32
  }
  func.func @transform_6(%arg0: i32, %arg1: i32) -> (i32, i32) {
    %c0_i32 = arith.constant 0 : i32
    %c0_i32_0 = arith.constant 0 : i32
    return %c0_i32, %arg1 : i32, i32
  }
  func.func @transform_7(%arg0: i32, %arg1: i32) -> (i32, i32) {
    %c0_i32 = arith.constant 0 : i32
    %c0_i32_0 = arith.constant 0 : i32
    return %c0_i32, %arg1 : i32, i32
  }
  func.func @transform_8(%arg0: i32, %arg1: i32) -> (i32, i32) {
    %c0_i32 = arith.constant 0 : i32
    %c0_i32_0 = arith.constant 0 : i32
    return %c0_i32, %arg1 : i32, i32
  }
  func.func @transform_9(%arg0: i32, %arg1: i32) -> (i32, i32) {
    %c0_i32 = arith.constant 0 : i32
    return %arg0, %arg1 : i32, i32
  }
  func.func @transform_10(%arg0: i32, %arg1: i32) -> (i32, i32) {
    %c0_i32 = arith.constant 0 : i32
    return %arg0, %arg1 : i32, i32
  }
  func.func @transform_11(%arg0: i32, %arg1: i32) -> (i32, i32) {
    %c0_i32 = arith.constant 0 : i32
    return %arg0, %arg1 : i32, i32
  }
}

module attributes {stable_mosaic.version = 11 : i64} {
  func.func @attention_kernel(%arg0: i32, %arg1: i32, %arg2: memref<1x8x32xbf16, #tpu.memory_space<vmem>>, %arg3: memref<1x8x32xbf16, #tpu.memory_space<vmem>>, %arg4: memref<1x8x32xbf16, #tpu.memory_space<vmem>>, %arg5: memref<1x8x32xbf16, #tpu.memory_space<vmem>>, %arg6: memref<1x1x4xf32, #tpu.memory_space<vmem>>, %arg7: memref<8x32xf32, #tpu.memory_space<vmem>>) attributes {dimension_semantics = [#tpu.dimension_semantics<parallel>, #tpu.dimension_semantics<parallel>], iteration_bounds = array<i64: 2, 1>, scalar_prefetch = 0 : i64, scratch_operands = 1 : i64, tpu.core_type = #tpu.core_type<tc>, window_params = [{transform_indices = @transform_0, window_bounds = array<i64: 1, 8, 32>}, {transform_indices = @transform_1, window_bounds = array<i64: 1, 8, 32>}, {transform_indices = @transform_2, window_bounds = array<i64: 1, 8, 32>}, {transform_indices = @transform_3, window_bounds = array<i64: 1, 8, 32>}, {transform_indices = @transform_4, window_bounds = array<i64: 1, 1, 4>}]} {
    %c0 = arith.constant 0 : index
    %c0_0 = arith.constant 0 : index
    %c0_1 = arith.constant 0 : index
    %0 = vector.load %arg2[%c0, %c0_0, %c0_1] : memref<1x8x32xbf16, #tpu.memory_space<vmem>>, vector<1x8x32xbf16>
    %1 = vector.shape_cast %0 : vector<1x8x32xbf16> to vector<8x32xbf16>
    %c0_2 = arith.constant 0 : index
    %c0_3 = arith.constant 0 : index
    %c0_4 = arith.constant 0 : index
    %2 = vector.load %arg3[%c0_2, %c0_3, %c0_4] : memref<1x8x32xbf16, #tpu.memory_space<vmem>>, vector<1x8x32xbf16>
    %3 = vector.shape_cast %2 : vector<1x8x32xbf16> to vector<8x32xbf16>
    %c0_5 = arith.constant 0 : index
    %c0_6 = arith.constant 0 : index
    %c0_7 = arith.constant 0 : index
    %4 = vector.load %arg4[%c0_5, %c0_6, %c0_7] : memref<1x8x32xbf16, #tpu.memory_space<vmem>>, vector<1x8x32xbf16>
    %5 = vector.shape_cast %4 : vector<1x8x32xbf16> to vector<8x32xbf16>
    %6 = tpu.iota {dimensions = array<i32: 0>} : vector<8x8xi32>
    %c8_i32 = arith.constant 8 : i32
    %7 = arith.muli %arg1, %c8_i32 : i32
    %8 = vector.broadcast %7 : i32 to vector<8x8xi32>
    %9 = arith.addi %6, %8 : vector<8x8xi32>
    %10 = tpu.iota {dimensions = array<i32: 1>} : vector<8x8xi32>
    %11 = arith.cmpi sle, %10, %9 : vector<8x8xi32>
    %cst = arith.constant 0.000000e+00 : f32
    %cst_8 = arith.constant -1.000000e+04 : f32
    %12 = vector.broadcast %cst : f32 to vector<8x8xf32>
    %13 = vector.broadcast %cst_8 : f32 to vector<8x8xf32>
    %14 = arith.select %11, %12, %13 : vector<8x8xi1>, vector<8x8xf32>
    %15 = vector.extract_strided_slice %1 {offsets = [0, 0], sizes = [8, 8], strides = [1, 1]} : vector<8x32xbf16> to vector<8x8xbf16>
    %16 = vector.extract_strided_slice %3 {offsets = [0, 0], sizes = [8, 8], strides = [1, 1]} : vector<8x32xbf16> to vector<8x8xbf16>
    %17 = vector.extract_strided_slice %5 {offsets = [0, 0], sizes = [8, 8], strides = [1, 1]} : vector<8x32xbf16> to vector<8x8xbf16>
    "tpu.trace_start"() <{level = 10 : i32, message = "qd,kd->qk"}> : () -> ()
    %cst_9 = arith.constant dense<0.000000e+00> : vector<8x8xf32>
    %18 = tpu.matmul %15, %16, %cst_9 {dimension_numbers = #tpu.dot_dimension_numbers<[1], [1], [0], [0], [0, 0, 1, 0], [], []>} : vector<8x8xbf16>, vector<8x8xbf16>, vector<8x8xf32> -> vector<8x8xf32>
    "tpu.trace_stop"() : () -> ()
    %cst_10 = arith.constant 0.353553385 : f32
    %19 = vector.broadcast %cst_10 : f32 to vector<8x8xf32>
    %20 = arith.mulf %18, %19 : vector<8x8xf32>
    %21 = arith.addf %20, %14 : vector<8x8xf32>
    %cst_11 = arith.constant dense<0xFF800000> : vector<8xf32>
    %22 = vector.multi_reduction <maximumf>, %21, %cst_11 [1] : vector<8x8xf32> to vector<8xf32>
    %23 = vector.shape_cast %22 : vector<8xf32> to vector<8x1xf32>
    %24 = vector.broadcast %23 : vector<8x1xf32> to vector<8x8xf32>
    %25 = arith.subf %21, %24 : vector<8x8xf32>
    %26 = math.exp %25 : vector<8x8xf32>
    %cst_12 = arith.constant dense<0.000000e+00> : vector<8xf32>
    %27 = vector.multi_reduction <add>, %26, %cst_12 [1] : vector<8x8xf32> to vector<8xf32>
    %28 = vector.shape_cast %27 : vector<8xf32> to vector<8x1xf32>
    %29 = tpu.reciprocal %28 {approx = true} : vector<8x1xf32> -> vector<8x1xf32>
    %30 = vector.broadcast %29 : vector<8x1xf32> to vector<8x8xf32>
    %31 = arith.mulf %26, %30 : vector<8x8xf32>
    %32 = arith.truncf %31 : vector<8x8xf32> to vector<8x8xbf16>
    %cst_13 = arith.constant dense<0.000000e+00> : vector<8x8xf32>
    %33 = tpu.matmul %32, %17, %cst_13 {dimension_numbers = #tpu.dot_dimension_numbers<[1], [0], [0], [1], [0, 0, 1, 1], [], []>} : vector<8x8xbf16>, vector<8x8xbf16>, vector<8x8xf32> -> vector<8x8xf32>
    %c0_14 = arith.constant 0 : index
    %c0_15 = arith.constant 0 : index
    %34 = vector.load %arg7[%c0_14, %c0_15] : memref<8x32xf32, #tpu.memory_space<vmem>>, vector<8x8xf32>
    tpu.vector_store %arg7[%c0_14, %c0_15], %33 {strides = array<i32>} : memref<8x32xf32, #tpu.memory_space<vmem>>, vector<8x8xf32>,
    %35 = arith.mulf %33, %33 : vector<8x8xf32>
    %cst_16 = arith.constant dense<0.000000e+00> : vector<8xf32>
    %36 = vector.multi_reduction <add>, %35, %cst_16 [1] : vector<8x8xf32> to vector<8xf32>
    %37 = vector.shape_cast %36 : vector<8xf32> to vector<8x1xf32>
    %38 = math.sqrt %37 : vector<8x1xf32>
    %cst_17 = arith.constant dense<0.000000e+00> : vector<1xf32>
    %39 = vector.multi_reduction <add>, %38, %cst_17 [0] : vector<8x1xf32> to vector<1xf32>
    %40 = vector.shape_cast %39 : vector<1xf32> to vector<1x1xf32>
    %41 = vector.extract_strided_slice %1 {offsets = [0, 8], sizes = [8, 8], strides = [1, 1]} : vector<8x32xbf16> to vector<8x8xbf16>
    %42 = vector.extract_strided_slice %3 {offsets = [0, 8], sizes = [8, 8], strides = [1, 1]} : vector<8x32xbf16> to vector<8x8xbf16>
    %43 = vector.extract_strided_slice %5 {offsets = [0, 8], sizes = [8, 8], strides = [1, 1]} : vector<8x32xbf16> to vector<8x8xbf16>
    "tpu.trace_start"() <{level = 10 : i32, message = "qd,kd->qk"}> : () -> ()
    %cst_18 = arith.constant dense<0.000000e+00> : vector<8x8xf32>
    %44 = tpu.matmul %41, %42, %cst_18 {dimension_numbers = #tpu.dot_dimension_numbers<[1], [1], [0], [0], [0, 0, 1, 0], [], []>} : vector<8x8xbf16>, vector<8x8xbf16>, vector<8x8xf32> -> vector<8x8xf32>
    "tpu.trace_stop"() : () -> ()
    %cst_19 = arith.constant 0.353553385 : f32
    %45 = vector.broadcast %cst_19 : f32 to vector<8x8xf32>
    %46 = arith.mulf %44, %45 : vector<8x8xf32>
    %47 = arith.addf %46, %14 : vector<8x8xf32>
    %cst_20 = arith.constant dense<0xFF800000> : vector<8xf32>
    %48 = vector.multi_reduction <maximumf>, %47, %cst_20 [1] : vector<8x8xf32> to vector<8xf32>
    %49 = vector.shape_cast %48 : vector<8xf32> to vector<8x1xf32>
    %50 = vector.broadcast %49 : vector<8x1xf32> to vector<8x8xf32>
    %51 = arith.subf %47, %50 : vector<8x8xf32>
    %52 = math.exp %51 : vector<8x8xf32>
    %cst_21 = arith.constant dense<0.000000e+00> : vector<8xf32>
    %53 = vector.multi_reduction <add>, %52, %cst_21 [1] : vector<8x8xf32> to vector<8xf32>
    %54 = vector.shape_cast %53 : vector<8xf32> to vector<8x1xf32>
    %55 = tpu.reciprocal %54 {approx = true} : vector<8x1xf32> -> vector<8x1xf32>
    %56 = vector.broadcast %55 : vector<8x1xf32> to vector<8x8xf32>
    %57 = arith.mulf %52, %56 : vector<8x8xf32>
    %58 = arith.truncf %57 : vector<8x8xf32> to vector<8x8xbf16>
    %cst_22 = arith.constant dense<0.000000e+00> : vector<8x8xf32>
    %59 = tpu.matmul %58, %43, %cst_22 {dimension_numbers = #tpu.dot_dimension_numbers<[1], [0], [0], [1], [0, 0, 1, 1], [], []>} : vector<8x8xbf16>, vector<8x8xbf16>, vector<8x8xf32> -> vector<8x8xf32>
    %c0_23 = arith.constant 0 : index
    %c8 = arith.constant 8 : index
    %60 = vector.load %arg7[%c0_23, %c8] : memref<8x32xf32, #tpu.memory_space<vmem>>, vector<8x8xf32>
    tpu.vector_store %arg7[%c0_23, %c8], %59 {strides = array<i32>} : memref<8x32xf32, #tpu.memory_space<vmem>>, vector<8x8xf32>,
    %61 = arith.mulf %59, %59 : vector<8x8xf32>
    %cst_24 = arith.constant dense<0.000000e+00> : vector<8xf32>
    %62 = vector.multi_reduction <add>, %61, %cst_24 [1] : vector<8x8xf32> to vector<8xf32>
    %63 = vector.shape_cast %62 : vector<8xf32> to vector<8x1xf32>
    %64 = math.sqrt %63 : vector<8x1xf32>
    %cst_25 = arith.constant dense<0.000000e+00> : vector<1xf32>
    %65 = vector.multi_reduction <add>, %64, %cst_25 [0] : vector<8x1xf32> to vector<1xf32>
    %66 = vector.shape_cast %65 : vector<1xf32> to vector<1x1xf32>
    %67 = vector.extract_strided_slice %1 {offsets = [0, 16], sizes = [8, 8], strides = [1, 1]} : vector<8x32xbf16> to vector<8x8xbf16>
    %68 = vector.extract_strided_slice %3 {offsets = [0, 16], sizes = [8, 8], strides = [1, 1]} : vector<8x32xbf16> to vector<8x8xbf16>
    %69 = vector.extract_strided_slice %5 {offsets = [0, 16], sizes = [8, 8], strides = [1, 1]} : vector<8x32xbf16> to vector<8x8xbf16>
    "tpu.trace_start"() <{level = 10 : i32, message = "qd,kd->qk"}> : () -> ()
    %cst_26 = arith.constant dense<0.000000e+00> : vector<8x8xf32>
    %70 = tpu.matmul %67, %68, %cst_26 {dimension_numbers = #tpu.dot_dimension_numbers<[1], [1], [0], [0], [0, 0, 1, 0], [], []>} : vector<8x8xbf16>, vector<8x8xbf16>, vector<8x8xf32> -> vector<8x8xf32>
    "tpu.trace_stop"() : () -> ()
    %cst_27 = arith.constant 0.353553385 : f32
    %71 = vector.broadcast %cst_27 : f32 to vector<8x8xf32>
    %72 = arith.mulf %70, %71 : vector<8x8xf32>
    %73 = arith.addf %72, %14 : vector<8x8xf32>
    %cst_28 = arith.constant dense<0xFF800000> : vector<8xf32>
    %74 = vector.multi_reduction <maximumf>, %73, %cst_28 [1] : vector<8x8xf32> to vector<8xf32>
    %75 = vector.shape_cast %74 : vector<8xf32> to vector<8x1xf32>
    %76 = vector.broadcast %75 : vector<8x1xf32> to vector<8x8xf32>
    %77 = arith.subf %73, %76 : vector<8x8xf32>
    %78 = math.exp %77 : vector<8x8xf32>
    %cst_29 = arith.constant dense<0.000000e+00> : vector<8xf32>
    %79 = vector.multi_reduction <add>, %78, %cst_29 [1] : vector<8x8xf32> to vector<8xf32>
    %80 = vector.shape_cast %79 : vector<8xf32> to vector<8x1xf32>
    %81 = tpu.reciprocal %80 {approx = true} : vector<8x1xf32> -> vector<8x1xf32>
    %82 = vector.broadcast %81 : vector<8x1xf32> to vector<8x8xf32>
    %83 = arith.mulf %78, %82 : vector<8x8xf32>
    %84 = arith.truncf %83 : vector<8x8xf32> to vector<8x8xbf16>
    %cst_30 = arith.constant dense<0.000000e+00> : vector<8x8xf32>
    %85 = tpu.matmul %84, %69, %cst_30 {dimension_numbers = #tpu.dot_dimension_numbers<[1], [0], [0], [1], [0, 0, 1, 1], [], []>} : vector<8x8xbf16>, vector<8x8xbf16>, vector<8x8xf32> -> vector<8x8xf32>
    %c0_31 = arith.constant 0 : index
    %c16 = arith.constant 16 : index
    %86 = vector.load %arg7[%c0_31, %c16] : memref<8x32xf32, #tpu.memory_space<vmem>>, vector<8x8xf32>
    tpu.vector_store %arg7[%c0_31, %c16], %85 {strides = array<i32>} : memref<8x32xf32, #tpu.memory_space<vmem>>, vector<8x8xf32>,
    %87 = arith.mulf %85, %85 : vector<8x8xf32>
    %cst_32 = arith.constant dense<0.000000e+00> : vector<8xf32>
    %88 = vector.multi_reduction <add>, %87, %cst_32 [1] : vector<8x8xf32> to vector<8xf32>
    %89 = vector.shape_cast %88 : vector<8xf32> to vector<8x1xf32>
    %90 = math.sqrt %89 : vector<8x1xf32>
    %cst_33 = arith.constant dense<0.000000e+00> : vector<1xf32>
    %91 = vector.multi_reduction <add>, %90, %cst_33 [0] : vector<8x1xf32> to vector<1xf32>
    %92 = vector.shape_cast %91 : vector<1xf32> to vector<1x1xf32>
    %93 = vector.extract_strided_slice %1 {offsets = [0, 24], sizes = [8, 8], strides = [1, 1]} : vector<8x32xbf16> to vector<8x8xbf16>
    %94 = vector.extract_strided_slice %3 {offsets = [0, 24], sizes = [8, 8], strides = [1, 1]} : vector<8x32xbf16> to vector<8x8xbf16>
    %95 = vector.extract_strided_slice %5 {offsets = [0, 24], sizes = [8, 8], strides = [1, 1]} : vector<8x32xbf16> to vector<8x8xbf16>
    "tpu.trace_start"() <{level = 10 : i32, message = "qd,kd->qk"}> : () -> ()
    %cst_34 = arith.constant dense<0.000000e+00> : vector<8x8xf32>
    %96 = tpu.matmul %93, %94, %cst_34 {dimension_numbers = #tpu.dot_dimension_numbers<[1], [1], [0], [0], [0, 0, 1, 0], [], []>} : vector<8x8xbf16>, vector<8x8xbf16>, vector<8x8xf32> -> vector<8x8xf32>
    "tpu.trace_stop"() : () -> ()
    %cst_35 = arith.constant 0.353553385 : f32
    %97 = vector.broadcast %cst_35 : f32 to vector<8x8xf32>
    %98 = arith.mulf %96, %97 : vector<8x8xf32>
    %99 = arith.addf %98, %14 : vector<8x8xf32>
    %cst_36 = arith.constant dense<0xFF800000> : vector<8xf32>
    %100 = vector.multi_reduction <maximumf>, %99, %cst_36 [1] : vector<8x8xf32> to vector<8xf32>
    %101 = vector.shape_cast %100 : vector<8xf32> to vector<8x1xf32>
    %102 = vector.broadcast %101 : vector<8x1xf32> to vector<8x8xf32>
    %103 = arith.subf %99, %102 : vector<8x8xf32>
    %104 = math.exp %103 : vector<8x8xf32>
    %cst_37 = arith.constant dense<0.000000e+00> : vector<8xf32>
    %105 = vector.multi_reduction <add>, %104, %cst_37 [1] : vector<8x8xf32> to vector<8xf32>
    %106 = vector.shape_cast %105 : vector<8xf32> to vector<8x1xf32>
    %107 = tpu.reciprocal %106 {approx = true} : vector<8x1xf32> -> vector<8x1xf32>
    %108 = vector.broadcast %107 : vector<8x1xf32> to vector<8x8xf32>
    %109 = arith.mulf %104, %108 : vector<8x8xf32>
    %110 = arith.truncf %109 : vector<8x8xf32> to vector<8x8xbf16>
    %cst_38 = arith.constant dense<0.000000e+00> : vector<8x8xf32>
    %111 = tpu.matmul %110, %95, %cst_38 {dimension_numbers = #tpu.dot_dimension_numbers<[1], [0], [0], [1], [0, 0, 1, 1], [], []>} : vector<8x8xbf16>, vector<8x8xbf16>, vector<8x8xf32> -> vector<8x8xf32>
    %c0_39 = arith.constant 0 : index
    %c24 = arith.constant 24 : index
    %112 = vector.load %arg7[%c0_39, %c24] : memref<8x32xf32, #tpu.memory_space<vmem>>, vector<8x8xf32>
    tpu.vector_store %arg7[%c0_39, %c24], %111 {strides = array<i32>} : memref<8x32xf32, #tpu.memory_space<vmem>>, vector<8x8xf32>,
    %113 = arith.mulf %111, %111 : vector<8x8xf32>
    %cst_40 = arith.constant dense<0.000000e+00> : vector<8xf32>
    %114 = vector.multi_reduction <add>, %113, %cst_40 [1] : vector<8x8xf32> to vector<8xf32>
    %115 = vector.shape_cast %114 : vector<8xf32> to vector<8x1xf32>
    %116 = math.sqrt %115 : vector<8x1xf32>
    %cst_41 = arith.constant dense<0.000000e+00> : vector<1xf32>
    %117 = vector.multi_reduction <add>, %116, %cst_41 [0] : vector<8x1xf32> to vector<1xf32>
    %118 = vector.shape_cast %117 : vector<1xf32> to vector<1x1xf32>
    %c0_42 = arith.constant 0 : index
    %c0_43 = arith.constant 0 : index
    %119 = vector.load %arg7[%c0_42, %c0_43] : memref<8x32xf32, #tpu.memory_space<vmem>>, vector<8x32xf32>
    %120 = arith.truncf %119 : vector<8x32xf32> to vector<8x32xbf16>
    %c0_44 = arith.constant 0 : index
    %c0_45 = arith.constant 0 : index
    %c0_46 = arith.constant 0 : index
    %121 = vector.load %arg5[%c0_44, %c0_45, %c0_46] : memref<1x8x32xbf16, #tpu.memory_space<vmem>>, vector<1x8x32xbf16>
    %122 = vector.shape_cast %121 : vector<1x8x32xbf16> to vector<8x32xbf16>
    %123 = vector.shape_cast %120 : vector<8x32xbf16> to vector<1x8x32xbf16>
    tpu.vector_store %arg5[%c0_44, %c0_45, %c0_46], %123 {strides = array<i32>} : memref<1x8x32xbf16, #tpu.memory_space<vmem>>, vector<1x8x32xbf16>,
    %124 = tpu.concatenate %40, %66, %92, %118 in 1 : vector<1x1xf32>, vector<1x1xf32>, vector<1x1xf32>, vector<1x1xf32> -> vector<1x4xf32>
    %c0_47 = arith.constant 0 : index
    %c0_48 = arith.constant 0 : index
    %c0_49 = arith.constant 0 : index
    %125 = vector.load %arg6[%c0_47, %c0_48, %c0_49] : memref<1x1x4xf32, #tpu.memory_space<vmem>>, vector<1x1x4xf32>
    %126 = vector.shape_cast %125 : vector<1x1x4xf32> to vector<1x4xf32>
    %127 = vector.shape_cast %124 : vector<1x4xf32> to vector<1x1x4xf32>
    tpu.vector_store %arg6[%c0_47, %c0_48, %c0_49], %127 {strides = array<i32>} : memref<1x1x4xf32, #tpu.memory_space<vmem>>, vector<1x1x4xf32>,
    return
  }
  func.func @transform_0(%arg0: i32, %arg1: i32) -> (i32, i32, i32) {
    %c0_i32 = arith.constant 0 : i32
    %c0_i32_0 = arith.constant 0 : i32
    return %arg0, %arg1, %c0_i32 : i32, i32, i32
  }
  func.func @transform_1(%arg0: i32, %arg1: i32) -> (i32, i32, i32) {
    %c0_i32 = arith.constant 0 : i32
    %c0_i32_0 = arith.constant 0 : i32
    %c0_i32_1 = arith.constant 0 : i32
    return %arg0, %c0_i32, %c0_i32_0 : i32, i32, i32
  }
  func.func @transform_2(%arg0: i32, %arg1: i32) -> (i32, i32, i32) {
    %c0_i32 = arith.constant 0 : i32
    %c0_i32_0 = arith.constant 0 : i32
    %c0_i32_1 = arith.constant 0 : i32
    return %arg0, %c0_i32, %c0_i32_0 : i32, i32, i32
  }
  func.func @transform_3(%arg0: i32, %arg1: i32) -> (i32, i32, i32) {
    %c0_i32 = arith.constant 0 : i32
    %c0_i32_0 = arith.constant 0 : i32
    return %arg0, %arg1, %c0_i32 : i32, i32, i32
  }
  func.func @transform_4(%arg0: i32, %arg1: i32) -> (i32, i32, i32) {
    %c0_i32 = arith.constant 0 : i32
    %c0_i32_0 = arith.constant 0 : i32
    return %arg0, %arg1, %c0_i32 : i32, i32, i32
  }
}

module attributes {stable_mosaic.version = 11 : i64} {
  func.func @oproj_kernel(%arg0: i32, %arg1: i32, %arg2: memref<16x32xf32, #tpu.memory_space<vmem>>, %arg3: memref<16x32xbf16, #tpu.memory_space<vmem>>, %arg4: memref<1x32xf32, #tpu.memory_space<vmem>>, %arg5: memref<32x32xbf16, #tpu.memory_space<vmem>>, %arg6: memref<1x32xf32, #tpu.memory_space<vmem>>, %arg7: memref<16x32xf32, #tpu.memory_space<vmem>>) attributes {dimension_semantics = [#tpu.dimension_semantics<parallel>, #tpu.dimension_semantics<parallel>], iteration_bounds = array<i64: 1, 1>, scalar_prefetch = 0 : i64, scratch_operands = 0 : i64, tpu.core_type = #tpu.core_type<tc>, window_params = [{transform_indices = @transform_0, window_bounds = array<i64: 16, 32>}, {transform_indices = @transform_1, window_bounds = array<i64: 16, 32>}, {pipeline_mode = #tpu.pipeline_mode<synchronous>, transform_indices = @transform_2, window_bounds = array<i64: 1, 32>}, {transform_indices = @transform_3, window_bounds = array<i64: 32, 32>}, {transform_indices = @transform_4, window_bounds = array<i64: 1, 32>}, {transform_indices = @transform_5, window_bounds = array<i64: 16, 32>}]} {
    %c0 = arith.constant 0 : index
    %c0_0 = arith.constant 0 : index
    %0 = vector.load %arg3[%c0, %c0_0] : memref<16x32xbf16, #tpu.memory_space<vmem>>, vector<16x32xbf16>
    %1 = arith.extf %0 : vector<16x32xbf16> to vector<16x32xf32>
    %c0_1 = arith.constant 0 : index
    %c0_2 = arith.constant 0 : index
    %2 = vector.load %arg4[%c0_1, %c0_2] : memref<1x32xf32, #tpu.memory_space<vmem>>, vector<1x32xf32>
    %3 = vector.broadcast %2 : vector<1x32xf32> to vector<16x32xf32>
    %4 = arith.mulf %1, %3 : vector<16x32xf32>
    %c0_3 = arith.constant 0 : index
    %c0_4 = arith.constant 0 : index
    %5 = vector.load %arg2[%c0_3, %c0_4] : memref<16x32xf32, #tpu.memory_space<vmem>>, vector<16x32xf32>
    %6 = arith.truncf %4 : vector<16x32xf32> to vector<16x32xbf16>
    %c0_5 = arith.constant 0 : index
    %c0_6 = arith.constant 0 : index
    %7 = vector.load %arg5[%c0_5, %c0_6] : memref<32x32xbf16, #tpu.memory_space<vmem>>, vector<32x32xbf16>
    %cst = arith.constant dense<0.000000e+00> : vector<16x32xf32>
    %8 = tpu.matmul %6, %7, %cst {dimension_numbers = #tpu.dot_dimension_numbers<[1], [0], [0], [1], [0, 0, 1, 1], [], []>} : vector<16x32xbf16>, vector<32x32xbf16>, vector<16x32xf32> -> vector<16x32xf32>
    %9 = arith.addf %5, %8 : vector<16x32xf32>
    %c0_7 = arith.constant 0 : index
    %c0_8 = arith.constant 0 : index
    %10 = vector.load %arg6[%c0_7, %c0_8] : memref<1x32xf32, #tpu.memory_space<vmem>>, vector<1x32xf32>
    %11 = vector.broadcast %10 : vector<1x32xf32> to vector<16x32xf32>
    %12 = arith.addf %9, %11 : vector<16x32xf32>
    %c0_9 = arith.constant 0 : index
    %c0_10 = arith.constant 0 : index
    %13 = vector.load %arg7[%c0_9, %c0_10] : memref<16x32xf32, #tpu.memory_space<vmem>>, vector<16x32xf32>
    tpu.vector_store %arg7[%c0_9, %c0_10], %12 {strides = array<i32>} : memref<16x32xf32, #tpu.memory_space<vmem>>, vector<16x32xf32>,
    return
  }
  func.func @transform_0(%arg0: i32, %arg1: i32) -> (i32, i32) {
    %c0_i32 = arith.constant 0 : i32
    return %arg0, %arg1 : i32, i32
  }
  func.func @transform_1(%arg0: i32, %arg1: i32) -> (i32, i32) {
    %c0_i32 = arith.constant 0 : i32
    %c0_i32_0 = arith.constant 0 : i32
    return %arg0, %c0_i32 : i32, i32
  }
  func.func @transform_2(%arg0: i32, %arg1: i32) -> (i32, i32) {
    %c0_i32 = arith.constant 0 : i32
    %c0_i32_0 = arith.constant 0 : i32
    %c0_i32_1 = arith.constant 0 : i32
    return %c0_i32, %c0_i32_0 : i32, i32
  }
  func.func @transform_3(%arg0: i32, %arg1: i32) -> (i32, i32) {
    %c0_i32 = arith.constant 0 : i32
    %c0_i32_0 = arith.constant 0 : i32
    return %c0_i32, %arg1 : i32, i32
  }
  func.func @transform_4(%arg0: i32, %arg1: i32) -> (i32, i32) {
    %c0_i32 = arith.constant 0 : i32
    %c0_i32_0 = arith.constant 0 : i32
    return %c0_i32, %arg1 : i32, i32
  }
  func.func @transform_5(%arg0: i32, %arg1: i32) -> (i32, i32) {
    %c0_i32 = arith.constant 0 : i32
    return %arg0, %arg1 : i32, i32
  }
}

module attributes {stable_mosaic.version = 11 : i64} {
  func.func @ffn_kernel(%arg0: i32, %arg1: i32, %arg2: memref<16x32xf32, #tpu.memory_space<vmem>>, %arg3: memref<1x32xf32, #tpu.memory_space<vmem>>, %arg4: memref<1x32xf32, #tpu.memory_space<vmem>>, %arg5: memref<32x128xbf16, #tpu.memory_space<vmem>>, %arg6: memref<1x128xf32, #tpu.memory_space<vmem>>, %arg7: memref<128x32xbf16, #tpu.memory_space<vmem>>, %arg8: memref<1x32xf32, #tpu.memory_space<vmem>>, %arg9: memref<16x32xf32, #tpu.memory_space<vmem>>, %arg10: memref<16x32xbf16, #tpu.memory_space<vmem>>, %arg11: memref<16x32xf32, #tpu.memory_space<vmem>>) attributes {dimension_semantics = [#tpu.dimension_semantics<parallel>, #tpu.dimension_semantics<arbitrary>], iteration_bounds = array<i64: 1, 1>, scalar_prefetch = 0 : i64, scratch_operands = 2 : i64, tpu.core_type = #tpu.core_type<tc>, window_params = [{transform_indices = @transform_0, window_bounds = array<i64: 16, 32>}, {pipeline_mode = #tpu.pipeline_mode<synchronous>, transform_indices = @transform_1, window_bounds = array<i64: 1, 32>}, {pipeline_mode = #tpu.pipeline_mode<synchronous>, transform_indices = @transform_2, window_bounds = array<i64: 1, 32>}, {transform_indices = @transform_3, window_bounds = array<i64: 32, 128>}, {transform_indices = @transform_4, window_bounds = array<i64: 1, 128>}, {transform_indices = @transform_5, window_bounds = array<i64: 128, 32>}, {pipeline_mode = #tpu.pipeline_mode<synchronous>, transform_indices = @transform_6, window_bounds = array<i64: 1, 32>}, {transform_indices = @transform_7, window_bounds = array<i64: 16, 32>}]} {
    %c0_i32 = arith.constant 0 : i32
    %0 = arith.cmpi eq, %arg1, %c0_i32 : i32
    %1 = arith.extui %0 : i1 to i32
    %c0_i32_0 = arith.constant 0 : i32
    %2 = arith.cmpi ne, %1, %c0_i32_0 : i32
    scf.if %2 {
      %c0_18 = arith.constant 0 : index
      %c0_19 = arith.constant 0 : index
      %26 = vector.load %arg2[%c0_18, %c0_19] : memref<16x32xf32, #tpu.memory_space<vmem>>, vector<16x32xf32>
      %c0_20 = arith.constant 0 : index
      %c0_21 = arith.constant 0 : index
      %27 = vector.load %arg3[%c0_20, %c0_21] : memref<1x32xf32, #tpu.memory_space<vmem>>, vector<1x32xf32>
      %c0_22 = arith.constant 0 : index
      %c0_23 = arith.constant 0 : index
      %28 = vector.load %arg4[%c0_22, %c0_23] : memref<1x32xf32, #tpu.memory_space<vmem>>, vector<1x32xf32>
      %cst_24 = arith.constant dense<0.000000e+00> : vector<16xf32>
      %29 = vector.multi_reduction <add>, %26, %cst_24 [1] : vector<16x32xf32> to vector<16xf32>
      %30 = vector.shape_cast %29 : vector<16xf32> to vector<16x1xf32>
      %cst_25 = arith.constant 3.200000e+01 : f32
      %31 = vector.broadcast %cst_25 : f32 to vector<16x1xf32>
      %32 = arith.divf %30, %31 : vector<16x1xf32>
      %33 = vector.broadcast %32 : vector<16x1xf32> to vector<16x32xf32>
      %34 = arith.subf %26, %33 : vector<16x32xf32>
      %35 = arith.mulf %34, %34 : vector<16x32xf32>
      %cst_26 = arith.constant dense<0.000000e+00> : vector<16xf32>
      %36 = vector.multi_reduction <add>, %35, %cst_26 [1] : vector<16x32xf32> to vector<16xf32>
      %37 = vector.shape_cast %36 : vector<16xf32> to vector<16x1xf32>
      %cst_27 = arith.constant 3.200000e+01 : f32
      %38 = vector.broadcast %cst_27 : f32 to vector<16x1xf32>
      %39 = arith.divf %37, %38 : vector<16x1xf32>
      %cst_28 = arith.constant 9.99999974E-6 : f32
      %40 = vector.broadcast %cst_28 : f32 to vector<16x1xf32>
      %41 = arith.addf %39, %40 : vector<16x1xf32>
      %42 = math.rsqrt %41 : vector<16x1xf32>
      %43 = vector.broadcast %42 : vector<16x1xf32> to vector<16x32xf32>
      %44 = arith.mulf %34, %43 : vector<16x32xf32>
      %45 = vector.broadcast %27 : vector<1x32xf32> to vector<16x32xf32>
      %46 = arith.mulf %44, %45 : vector<16x32xf32>
      %47 = vector.broadcast %28 : vector<1x32xf32> to vector<16x32xf32>
      %48 = arith.addf %46, %47 : vector<16x32xf32>
      %49 = arith.truncf %48 : vector<16x32xf32> to vector<16x32xbf16>
      %c0_29 = arith.constant 0 : index
      %c0_30 = arith.constant 0 : index
      %50 = vector.load %arg10[%c0_29, %c0_30] : memref<16x32xbf16, #tpu.memory_space<vmem>>, vector<16x32xbf16>
      tpu.vector_store %arg10[%c0_29, %c0_30], %49 {strides = array<i32>} : memref<16x32xbf16, #tpu.memory_space<vmem>>, vector<16x32xbf16>,
      %cst_31 = arith.constant 0.000000e+00 : f32
      %51 = vector.broadcast %cst_31 : f32 to vector<16x32xf32>
      %c0_32 = arith.constant 0 : index
      %c0_33 = arith.constant 0 : index
      %52 = vector.load %arg11[%c0_32, %c0_33] : memref<16x32xf32, #tpu.memory_space<vmem>>, vector<16x32xf32>
      tpu.vector_store %arg11[%c0_32, %c0_33], %51 {strides = array<i32>} : memref<16x32xf32, #tpu.memory_space<vmem>>, vector<16x32xf32>,
    } else {
    }
    %c0 = arith.constant 0 : index
    %c0_1 = arith.constant 0 : index
    %3 = vector.load %arg10[%c0, %c0_1] : memref<16x32xbf16, #tpu.memory_space<vmem>>, vector<16x32xbf16>
    %c0_2 = arith.constant 0 : index
    %c0_3 = arith.constant 0 : index
    %4 = vector.load %arg5[%c0_2, %c0_3] : memref<32x128xbf16, #tpu.memory_space<vmem>>, vector<32x128xbf16>
    %cst = arith.constant dense<0.000000e+00> : vector<16x128xf32>
    %5 = tpu.matmul %3, %4, %cst {dimension_numbers = #tpu.dot_dimension_numbers<[1], [0], [0], [1], [0, 0, 1, 1], [], []>} : vector<16x32xbf16>, vector<32x128xbf16>, vector<16x128xf32> -> vector<16x128xf32>
    %c0_4 = arith.constant 0 : index
    %c0_5 = arith.constant 0 : index
    %6 = vector.load %arg6[%c0_4, %c0_5] : memref<1x128xf32, #tpu.memory_space<vmem>>, vector<1x128xf32>
    %7 = vector.broadcast %6 : vector<1x128xf32> to vector<16x128xf32>
    %8 = arith.addf %5, %7 : vector<16x128xf32>
    %cst_6 = arith.constant 5.000000e-01 : f32
    %9 = vector.broadcast %cst_6 : f32 to vector<16x128xf32>
    %10 = arith.mulf %9, %8 : vector<16x128xf32>
    %cst_7 = arith.constant 1.41421354 : f32
    %11 = vector.broadcast %cst_7 : f32 to vector<16x128xf32>
    %12 = arith.divf %8, %11 : vector<16x128xf32>
    %13 = math.erf %12 : vector<16x128xf32>
    %cst_8 = arith.constant 1.000000e+00 : f32
    %14 = vector.broadcast %cst_8 : f32 to vector<16x128xf32>
    %15 = arith.addf %14, %13 : vector<16x128xf32>
    %16 = arith.mulf %10, %15 : vector<16x128xf32>
    %c0_9 = arith.constant 0 : index
    %c0_10 = arith.constant 0 : index
    %17 = vector.load %arg11[%c0_9, %c0_10] : memref<16x32xf32, #tpu.memory_space<vmem>>, vector<16x32xf32>
    %18 = arith.truncf %16 : vector<16x128xf32> to vector<16x128xbf16>
    %c0_11 = arith.constant 0 : index
    %c0_12 = arith.constant 0 : index
    %19 = vector.load %arg7[%c0_11, %c0_12] : memref<128x32xbf16, #tpu.memory_space<vmem>>, vector<128x32xbf16>
    %cst_13 = arith.constant dense<0.000000e+00> : vector<16x32xf32>
    %20 = tpu.matmul %18, %19, %cst_13 {dimension_numbers = #tpu.dot_dimension_numbers<[1], [0], [0], [1], [0, 0, 1, 1], [], []>} : vector<16x128xbf16>, vector<128x32xbf16>, vector<16x32xf32> -> vector<16x32xf32>
    %21 = arith.addf %17, %20 : vector<16x32xf32>
    %c0_14 = arith.constant 0 : index
    %c0_15 = arith.constant 0 : index
    %22 = vector.load %arg11[%c0_14, %c0_15] : memref<16x32xf32, #tpu.memory_space<vmem>>, vector<16x32xf32>
    tpu.vector_store %arg11[%c0_14, %c0_15], %21 {strides = array<i32>} : memref<16x32xf32, #tpu.memory_space<vmem>>, vector<16x32xf32>,
    %c0_i32_16 = arith.constant 0 : i32
    %23 = arith.cmpi eq, %arg1, %c0_i32_16 : i32
    %24 = arith.extui %23 : i1 to i32
    %c0_i32_17 = arith.constant 0 : i32
    %25 = arith.cmpi ne, %24, %c0_i32_17 : i32
    scf.if %25 {
      %c0_18 = arith.constant 0 : index
      %c0_19 = arith.constant 0 : index
      %26 = vector.load %arg2[%c0_18, %c0_19] : memref<16x32xf32, #tpu.memory_space<vmem>>, vector<16x32xf32>
      %c0_20 = arith.constant 0 : index
      %c0_21 = arith.constant 0 : index
      %27 = vector.load %arg11[%c0_20, %c0_21] : memref<16x32xf32, #tpu.memory_space<vmem>>, vector<16x32xf32>
      %28 = arith.addf %26, %27 : vector<16x32xf32>
      %c0_22 = arith.constant 0 : index
      %c0_23 = arith.constant 0 : index
      %29 = vector.load %arg8[%c0_22, %c0_23] : memref<1x32xf32, #tpu.memory_space<vmem>>, vector<1x32xf32>
      %30 = vector.broadcast %29 : vector<1x32xf32> to vector<16x32xf32>
      %31 = arith.addf %28, %30 : vector<16x32xf32>
      %c0_24 = arith.constant 0 : index
      %c0_25 = arith.constant 0 : index
      %32 = vector.load %arg9[%c0_24, %c0_25] : memref<16x32xf32, #tpu.memory_space<vmem>>, vector<16x32xf32>
      tpu.vector_store %arg9[%c0_24, %c0_25], %31 {strides = array<i32>} : memref<16x32xf32, #tpu.memory_space<vmem>>, vector<16x32xf32>,
    } else {
    }
    return
  }
  func.func @transform_0(%arg0: i32, %arg1: i32) -> (i32, i32) {
    %c0_i32 = arith.constant 0 : i32
    %c0_i32_0 = arith.constant 0 : i32
    return %arg0, %c0_i32 : i32, i32
  }
  func.func @transform_1(%arg0: i32, %arg1: i32) -> (i32, i32) {
    %c0_i32 = arith.constant 0 : i32
    %c0_i32_0 = arith.constant 0 : i32
    %c0_i32_1 = arith.constant 0 : i32
    return %c0_i32, %c0_i32_0 : i32, i32
  }
  func.func @transform_2(%arg0: i32, %arg1: i32) -> (i32, i32) {
    %c0_i32 = arith.constant 0 : i32
    %c0_i32_0 = arith.constant 0 : i32
    %c0_i32_1 = arith.constant 0 : i32
    return %c0_i32, %c0_i32_0 : i32, i32
  }
  func.func @transform_3(%arg0: i32, %arg1: i32) -> (i32, i32) {
    %c0_i32 = arith.constant 0 : i32
    %c0_i32_0 = arith.constant 0 : i32
    return %c0_i32, %arg1 : i32, i32
  }
  func.func @transform_4(%arg0: i32, %arg1: i32) -> (i32, i32) {
    %c0_i32 = arith.constant 0 : i32
    %c0_i32_0 = arith.constant 0 : i32
    return %c0_i32, %arg1 : i32, i32
  }
  func.func @transform_5(%arg0: i32, %arg1: i32) -> (i32, i32) {
    %c0_i32 = arith.constant 0 : i32
    %c0_i32_0 = arith.constant 0 : i32
    return %arg1, %c0_i32 : i32, i32
  }
  func.func @transform_6(%arg0: i32, %arg1: i32) -> (i32, i32) {
    %c0_i32 = arith.constant 0 : i32
    %c0_i32_0 = arith.constant 0 : i32
    %c0_i32_1 = arith.constant 0 : i32
    return %c0_i32, %c0_i32_0 : i32, i32
  }
  func.func @transform_7(%arg0: i32, %arg1: i32) -> (i32, i32) {
    %c0_i32 = arith.constant 0 : i32
    %c0_i32_0 = arith.constant 0 : i32
    return %arg0, %c0_i32 : i32, i32
  }
}

module attributes {stable_mosaic.version = 11 : i64} {
  func.func @lm_head_kernel(%arg0: i32, %arg1: i32, %arg2: memref<16x32xf32, #tpu.memory_space<vmem>>, %arg3: memref<1x32xf32, #tpu.memory_space<vmem>>, %arg4: memref<1x32xf32, #tpu.memory_space<vmem>>, %arg5: memref<32x64xbf16, #tpu.memory_space<vmem>>, %arg6: memref<16x64xf32, #tpu.memory_space<vmem>>) attributes {dimension_semantics = [#tpu.dimension_semantics<parallel>, #tpu.dimension_semantics<parallel>], iteration_bounds = array<i64: 1, 1>, scalar_prefetch = 0 : i64, scratch_operands = 0 : i64, tpu.core_type = #tpu.core_type<tc>, window_params = [{transform_indices = @transform_0, window_bounds = array<i64: 16, 32>}, {pipeline_mode = #tpu.pipeline_mode<synchronous>, transform_indices = @transform_1, window_bounds = array<i64: 1, 32>}, {pipeline_mode = #tpu.pipeline_mode<synchronous>, transform_indices = @transform_2, window_bounds = array<i64: 1, 32>}, {transform_indices = @transform_3, window_bounds = array<i64: 32, 64>}, {transform_indices = @transform_4, window_bounds = array<i64: 16, 64>}]} {
    %c0 = arith.constant 0 : index
    %c0_0 = arith.constant 0 : index
    %0 = vector.load %arg2[%c0, %c0_0] : memref<16x32xf32, #tpu.memory_space<vmem>>, vector<16x32xf32>
    %c0_1 = arith.constant 0 : index
    %c0_2 = arith.constant 0 : index
    %1 = vector.load %arg3[%c0_1, %c0_2] : memref<1x32xf32, #tpu.memory_space<vmem>>, vector<1x32xf32>
    %c0_3 = arith.constant 0 : index
    %c0_4 = arith.constant 0 : index
    %2 = vector.load %arg4[%c0_3, %c0_4] : memref<1x32xf32, #tpu.memory_space<vmem>>, vector<1x32xf32>
    %cst = arith.constant dense<0.000000e+00> : vector<16xf32>
    %3 = vector.multi_reduction <add>, %0, %cst [1] : vector<16x32xf32> to vector<16xf32>
    %4 = vector.shape_cast %3 : vector<16xf32> to vector<16x1xf32>
    %cst_5 = arith.constant 3.200000e+01 : f32
    %5 = vector.broadcast %cst_5 : f32 to vector<16x1xf32>
    %6 = arith.divf %4, %5 : vector<16x1xf32>
    %7 = vector.broadcast %6 : vector<16x1xf32> to vector<16x32xf32>
    %8 = arith.subf %0, %7 : vector<16x32xf32>
    %9 = arith.mulf %8, %8 : vector<16x32xf32>
    %cst_6 = arith.constant dense<0.000000e+00> : vector<16xf32>
    %10 = vector.multi_reduction <add>, %9, %cst_6 [1] : vector<16x32xf32> to vector<16xf32>
    %11 = vector.shape_cast %10 : vector<16xf32> to vector<16x1xf32>
    %cst_7 = arith.constant 3.200000e+01 : f32
    %12 = vector.broadcast %cst_7 : f32 to vector<16x1xf32>
    %13 = arith.divf %11, %12 : vector<16x1xf32>
    %cst_8 = arith.constant 9.99999974E-6 : f32
    %14 = vector.broadcast %cst_8 : f32 to vector<16x1xf32>
    %15 = arith.addf %13, %14 : vector<16x1xf32>
    %16 = math.rsqrt %15 : vector<16x1xf32>
    %17 = vector.broadcast %16 : vector<16x1xf32> to vector<16x32xf32>
    %18 = arith.mulf %8, %17 : vector<16x32xf32>
    %19 = vector.broadcast %1 : vector<1x32xf32> to vector<16x32xf32>
    %20 = arith.mulf %18, %19 : vector<16x32xf32>
    %21 = vector.broadcast %2 : vector<1x32xf32> to vector<16x32xf32>
    %22 = arith.addf %20, %21 : vector<16x32xf32>
    %23 = arith.truncf %22 : vector<16x32xf32> to vector<16x32xbf16>
    %c0_9 = arith.constant 0 : index
    %c0_10 = arith.constant 0 : index
    %24 = vector.load %arg5[%c0_9, %c0_10] : memref<32x64xbf16, #tpu.memory_space<vmem>>, vector<32x64xbf16>
    %cst_11 = arith.constant dense<0.000000e+00> : vector<16x64xf32>
    %25 = tpu.matmul %23, %24, %cst_11 {dimension_numbers = #tpu.dot_dimension_numbers<[1], [0], [0], [1], [0, 0, 1, 1], [], []>} : vector<16x32xbf16>, vector<32x64xbf16>, vector<16x64xf32> -> vector<16x64xf32>
    %c0_12 = arith.constant 0 : index
    %c0_13 = arith.constant 0 : index
    %26 = vector.load %arg6[%c0_12, %c0_13] : memref<16x64xf32, #tpu.memory_space<vmem>>, vector<16x64xf32>
    tpu.vector_store %arg6[%c0_12, %c0_13], %25 {strides = array<i32>} : memref<16x64xf32, #tpu.memory_space<vmem>>, vector<16x64xf32>,
    return
  }
  func.func @transform_0(%arg0: i32, %arg1: i32) -> (i32, i32) {
    %c0_i32 = arith.constant 0 : i32
    %c0_i32_0 = arith.constant 0 : i32
    return %arg0, %c0_i32 : i32, i32
  }
  func.func @transform_1(%arg0: i32, %arg1: i32) -> (i32, i32) {
    %c0_i32 = arith.constant 0 : i32
    %c0_i32_0 = arith.constant 0 : i32
    %c0_i32_1 = arith.constant 0 : i32
    return %c0_i32, %c0_i32_0 : i32, i32
  }
  func.func @transform_2(%arg0: i32, %arg1: i32) -> (i32, i32) {
    %c0_i32 = arith.constant 0 : i32
    %c0_i32_0 = arith.constant 0 : i32
    %c0_i32_1 = arith.constant 0 : i32
    return %c0_i32, %c0_i32_0 : i32, i32
  }
  func.func @transform_3(%arg0: i32, %arg1: i32) -> (i32, i32) {
    %c0_i32 = arith.constant 0 : i32
    %c0_i32_0 = arith.constant 0 : i32
    return %c0_i32, %arg1 : i32, i32
  }
  func.func @transform_4(%arg0: i32, %arg1: i32) -> (i32, i32) {
    %c0_i32 = arith.constant 0 : i32
    return %arg0, %arg1 : i32, i32
  }
}

</mosaic_0001>

<bundles_post_ra>
// kernel: _lambda_.11
= control target key start
LH: loop header
LB: loop body
LE: loop exit
PB: predicated region body
PF: predicated region fallthrough
CT: control target
= control target key end

     0   :  { %v139_v0 = vmov 0.0   ;;  %vm140_vm0 = vmmov 0   ;;  %vm53_vm1 = vcmask 261120   ;;  %s201_s3 = inlined_call_operand.vmem [shape: bf16[32,32], index: 3, kind: input, shape index: {}]   ;;  %s202_s1 = inlined_call_operand.vmem [shape: bf16[16,32], index: 1, kind: input, shape index: {}]   ;;  %s203_s2 = inlined_call_operand.vmem [shape: f32[1,32], index: 2, kind: input, shape index: {}]   ;;  %s204_s0 = inlined_call_operand.vmem [shape: f32[16,32], index: 0, kind: input, shape index: {}]   ;;  %s205_s4 = inlined_call_operand.vmem [shape: f32[1,32], index: 4, kind: input, shape index: {}]   ;;  %s206_s5 = inlined_call_operand.vmem [shape: f32[16,32], index: 5, kind: output, shape index: {}]  }
   0x1   :  { %127 = vmatprep.subr.bf16.mxu0 %v139_v0  ;;  %v137_v1 = vld [vmem:[%s201_s3 + $0x8] sm:$0xff]   ;;  %131 = vmatprep.mubr.msk.bf16.mxu0 %vm140_vm0, %v139_v0  ;;  %v138_v2 = vld [vmem:[%s201_s3] sm:$0xff]  }
   0x2   :  { %128 = vmatpush3.bf16.msra.mxu0 %v137_v1  ;;  %v121_v3 = vld [vmem:[%s202_s1] sm:$0xff]   ;;  %v35_v15 = vld [vmem:[%s204_s0 + $0x8] sm:$0xff] }
   0x3   :  { %v115_v4 = vld [vmem:[%s203_s2] ss:$0 sm:$0xff]  ;;  %129 = vmatprep.subr.bf16.mxu0 %v139_v0  ;;  %v122_v5 = vunpack.c.l.bf16 %v121_v3  ;;  %v123_v6 = vunpack.c.h.bf16 %v121_v3 }
   0x4   :  { %v34_v10 = vld [vmem:[%s204_s0] sm:$0xff] }
   0x5   :  { %v32_v7 = vmul.f32 %v122_v5, %v115_v4  ;;  %v33_v8 = vmul.f32 %v123_v6, %v115_v4  ;;  %v119_v12 = vld [vmem:[%s205_s4] ss:$0 sm:$0xff] }
   0x6   :  { %130 = vmatpush3.bf16.msra.mxu0 %v138_v2 }
   0x7   :  { %v36_v9 = vpack.c.bf16 %v33_v8, %v32_v7 }
   0x9   :  { %132 = vmatmul.mubr.msk.bf16.vlgmr.msra.gmra.mxu0 %vm53_vm1, %v36_v9 }
  0xc9   :  { %v91_v11 = vpop.f32.mrf.mxu0 }
  0xca   :  { %v98_v13 = vadd.f32 %v91_v11, %v34_v10 }
  0xcb   :  { %v133_v14 = vpop.f32.mrf.mxu0 }
  0xcc   :  { %v107_v16 = vadd.f32 %v119_v12, %v98_v13 }
  0xcd   :  { %v94_v17 = vpop.f32.mrf.mxu0 }
  0xce   :  { %109 = vst.msk [vmem:[%s206_s5] sm:$0xff] %vm53_vm1, %v107_v16  ;;  %v99_v18 = vadd.f32 %v94_v17, %v35_v15 }
  0xcf   :  { %v134_v19 = vpop.f32.mrf.mxu0 }
  0xd0   :  { %v108_v20 = vadd.f32 %v119_v12, %v99_v18 }
  0xd2   :  { %110 = vst.msk [vmem:[%s206_s5 + $0x8] sm:$0xff] %vm53_vm1, %v108_v20 }

// kernel: _lambda_.9
= control target key start
LH: loop header
LB: loop body
LE: loop exit
PB: predicated region body
PF: predicated region fallthrough
CT: control target
= control target key end

     0   :  { %vm40_vm0 = vcmask 261120   ;;  %v394_v14 = vmov 0.0   ;;  %vm395_vm1 = vmmov 0   ;;  %vm160_vm2 = vcmask 257024   ;;  %s529_s0 = inlined_call_operand.vmem [shape: f32[16,32], index: 0, kind: input, shape index: {}]   ;;  %s530_s3 = inlined_call_operand.vmem [shape: bf16[32,32], index: 3, kind: input, shape index: {}]   ;;  %s531_s5 = inlined_call_operand.vmem [shape: bf16[32,32], index: 5, kind: input, shape index: {}]   ;;  %s532_s7 = inlined_call_operand.vmem [shape: bf16[32,32], index: 7, kind: input, shape index: {}]   ;;  %s533_s1 = inlined_call_operand.vmem [shape: f32[1,32], index: 1, kind: input, shape index: {}]   ;;  %s534_s2 = inlined_call_operand.vmem [shape: f32[1,32], index: 2, kind: input, shape index: {}]   ;;  %s535_s4 = inlined_call_operand.vmem [shape: f32[1,32], index: 4, kind: input, shape index: {}]   ;;  %s536_s6 = inlined_call_operand.vmem [shape: f32[1,32], index: 6, kind: input, shape index: {}]   ;;  %s537_s9 = inlined_call_operand.vmem [shape: bf16[16,32], index: 9, kind: output, shape index: {0}]   ;;  %s538_s10 = inlined_call_operand.vmem [shape: bf16[16,32], index: 10, kind: output, shape index: {1}]   ;;  %s539_s8 = inlined_call_operand.vmem [shape: f32[1,32], index: 8, kind: input, shape index: {}]   ;;  %s540_s11 = inlined_call_operand.vmem [shape: bf16[16,32], index: 11, kind: output, shape index: {2}]  }
   0x1   :  { %v36_v0 = vld [vmem:[%s529_s0] sm:$0xff]  ;;  %v37_v1 = vld [vmem:[%s529_s0 + $0x8] sm:$0xff]  ;;  %358 = vmatprep.subr.bf16.mxu0 %v394_v14  ;;  %366 = vmatprep.subr.bf16.mxu1 %v394_v14 }
   0x2   :  { %v41_v2 = vsel %vm40_vm0, %v36_v0, 0.0  ;;  %v44_v3 = vsel %vm40_vm0, %v37_v1, 0.0  ;;  %v384_v15 = vld [vmem:[%s530_s3 + $0x8] sm:$0xff]   ;;  %362 = vmatprep.mubr.msk.bf16.mxu0 %vm395_vm1, %v394_v14  ;;  %370 = vmatprep.mubr.msk.bf16.mxu1 %vm395_vm1, %v394_v14  ;;  %v386_v17 = vld [vmem:[%s530_s3] sm:$0xff]  }
   0x3   :  { %42 = vadd.xlane.f32.xlu0 %v41_v2  ;;  %v385_v16 = vld [vmem:[%s531_s5 + $0x8] sm:$0xff]   ;;  %359 = vmatpush3.bf16.msra.mxu0 %v384_v15  ;;  %v387_v18 = vld [vmem:[%s531_s5] sm:$0xff]  }
   0x4   :  { %367 = vmatpush3.bf16.msra.mxu1 %v385_v16  ;;  %360 = vmatprep.subr.bf16.mxu0 %v394_v14  ;;  %v323_v27 = vld [vmem:[%s533_s1] ss:$0 sm:$0xff]  ;;  %v388_v35 = vld [vmem:[%s532_s7 + $0x8] sm:$0xff]  }
   0x5   :  { %368 = vmatprep.subr.bf16.mxu1 %v394_v14  ;;  %v324_v31 = vld [vmem:[%s534_s2] ss:$0 sm:$0xff] }
   0x6   :  { %v389_v37 = vld [vmem:[%s532_s7] sm:$0xff]  }
   0x7   :  { %45 = vadd.xlane.f32.xlu0 %v44_v3  ;;  %361 = vmatpush3.bf16.msra.mxu0 %v386_v17  ;;  %v325_v38 = vld [vmem:[%s535_s4] ss:$0 sm:$0xff] }
   0x8   :  { %369 = vmatpush3.bf16.msra.mxu1 %v387_v18  ;;  %374 = vmatprep.subr.bf16.mxu0 %v394_v14  ;;  %v331_v39 = vld [vmem:[%s536_s6] ss:$0 sm:$0xff] }
   0x9   :  { %v337_v54 = vld [vmem:[%s539_s8] ss:$0 sm:$0xff] }
  0x8c   :  { %v43_v4 = vpop.xlane.xlu0 %42 }
  0x8d   :  { %v48_v5 = vmul.f32 0.03125, %v43_v4 }
  0x8f   :  { %v50_v6 = vsub.f32 %v36_v0, %v48_v5 }
  0x90   :  { %v46_v7 = vpop.xlane.xlu0 %45 }
  0x91   :  { %v49_v8 = vmul.f32 0.03125, %v46_v7  ;;  %v52_v9 = vmul.f32 %v50_v6, %v50_v6 }
  0x93   :  { %v51_v10 = vsub.f32 %v37_v1, %v49_v8  ;;  %v54_v11 = vsel %vm40_vm0, %v52_v9, 0.0 }
  0x94   :  { %55 = vadd.xlane.f32.xlu1 %v54_v11 }
  0x95   :  { %v53_v12 = vmul.f32 %v51_v10, %v51_v10 }
  0x97   :  { %v57_v13 = vsel %vm40_vm0, %v53_v12, 0.0 }
  0x98   :  { %58 = vadd.xlane.f32.xlu1 %v57_v13 }
 0x11d   :  { %v56_v19 = vpop.xlane.xlu1 %55 }
 0x11e   :  { %v60_v20 = vmul.f32 0.03125, %v56_v19 }
 0x120   :  { %v62_v21 = vadd.f32 1e-05, %v60_v20 }
 0x121   :  { %v59_v22 = vpop.xlane.xlu1 %58 }
 0x122   :  { %390 = vrsqrt.f32 %v62_v21  ;;  %v61_v23 = vmul.f32 0.03125, %v59_v22 }
 0x124   :  { %v63_v24 = vadd.f32 1e-05, %v61_v23 }
 0x126   :  { %392 = vrsqrt.f32 %v63_v24 }
 0x12f   :  { %v391_v25 = vpop.eup %390 }
 0x130   :  { %v66_v26 = vmul.f32 %v391_v25, %v50_v6 }
 0x132   :  { %v74_v30 = vmul.f32 %v323_v27, %v66_v26 }
 0x133   :  { %v393_v28 = vpop.eup %392 }
 0x134   :  { %v67_v29 = vmul.f32 %v393_v28, %v51_v10  ;;  %v82_v33 = vadd.f32 %v324_v31, %v74_v30 }
 0x136   :  { %v75_v32 = vmul.f32 %v323_v27, %v67_v29 }
 0x138   :  { %v83_v34 = vadd.f32 %v324_v31, %v75_v32 }
 0x13a   :  { %v84_v36 = vpack.c.bf16 %v83_v34, %v82_v33 }
 0x13c   :  { %363 = vmatmul.mubr.msk.bf16.vlgmr.msra.gmra.mxu0 %vm40_vm0, %v84_v36  ;;  %371 = vmatmul.mubr.msk.bf16.vlgmr.msra.gmra.mxu1 %vm40_vm0, %v84_v36 }
 0x13d   :  { %375 = vmatpush3.bf16.msra.mxu0 %v388_v35  ;;  %378 = vmatprep.mubr.msk.bf16.mxu0 %vm395_vm1, %v394_v14 }
 0x13e   :  { %376 = vmatprep.subr.bf16.mxu0 %v394_v14 }
 0x141   :  { %377 = vmatpush3.bf16.msra.mxu0 %v389_v37 }
 0x144   :  { %379 = vmatmul.mubr.msk.bf16.vlgmr.msra.gmra.mxu0 %vm40_vm0, %v84_v36 }
 0x1fc   :  { %v145_v40 = vpop.f32.mrf.mxu0  ;;  %v220_v41 = vpop.f32.mrf.mxu1 }
 0x1fd   :  { %v146_v42 = vadd.f32 %v325_v38, %v145_v40  ;;  %v221_v43 = vadd.f32 %v331_v39, %v220_v41 }
 0x1fe   :  { %v364_v44 = vpop.f32.mrf.mxu0  ;;  %v372_v45 = vpop.f32.mrf.mxu1 }
 0x1ff   :  { %v343_v46 = vpack.c.bf16 %v146_v42, %v146_v42  ;;  %v345_v47 = vpack.c.bf16 %v221_v43, %v221_v43 }
 0x200   :  { %v148_v48 = vpop.f32.mrf.mxu0  ;;  %v223_v49 = vpop.f32.mrf.mxu1 }
 0x201   :  { %161 = vst.msk [vmem:[%s537_s9] sm:$0xf] %vm160_vm2, %v343_v46  ;;  %235 = vst.msk [vmem:[%s538_s10] sm:$0xf] %vm160_vm2, %v345_v47  ;;  %v149_v50 = vadd.f32 %v325_v38, %v148_v48  ;;  %v224_v51 = vadd.f32 %v331_v39, %v223_v49 }
 0x202   :  { %v365_v52 = vpop.f32.mrf.mxu0  ;;  %v373_v53 = vpop.f32.mrf.mxu1 }
 0x203   :  { %v344_v55 = vpack.c.bf16 %v149_v50, %v149_v50  ;;  %v346_v56 = vpack.c.bf16 %v224_v51, %v224_v51 }
 0x204   :  { %v294_v57 = vpop.f32.mrf.mxu0 }
 0x205   :  { %162 = vst.msk [vmem:[%s537_s9 + $0x4] sm:$0xf] %vm160_vm2, %v344_v55  ;;  %236 = vst.msk [vmem:[%s538_s10 + $0x4] sm:$0xf] %vm160_vm2, %v346_v56  ;;  %v295_v58 = vadd.f32 %v337_v54, %v294_v57 }
 0x206   :  { %v380_v59 = vpop.f32.mrf.mxu0 }
 0x207   :  { %v347_v60 = vpack.c.bf16 %v295_v58, %v295_v58 }
 0x208   :  { %v297_v61 = vpop.f32.mrf.mxu0 }
 0x209   :  { %309 = vst.msk [vmem:[%s540_s11] sm:$0xf] %vm160_vm2, %v347_v60  ;;  %v298_v62 = vadd.f32 %v337_v54, %v297_v61 }
 0x20a   :  { %v381_v63 = vpop.f32.mrf.mxu0 }
 0x20b   :  { %v348_v0 = vpack.c.bf16 %v298_v62, %v298_v62 }
 0x20d   :  { %310 = vst.msk [vmem:[%s540_s11 + $0x4] sm:$0xf] %vm160_vm2, %v348_v0 }

// kernel: _lambda_.10
= control target key start
LH: loop header
LB: loop body
LE: loop exit
PB: predicated region body
PF: predicated region fallthrough
CT: control target
= control target key end

     0   :  { %s1177_s15 = smov 0   ;;  %s1179_s16 = smov 0   ;;  %s1302_s0 = inlined_call_operand.vmem [shape: bf16[2,8,32], index: 0, kind: input, shape index: {}]   ;;  %s1303_s1 = inlined_call_operand.vmem [shape: bf16[2,8,32], index: 1, kind: input, shape index: {}]   ;;  %s1304_s2 = inlined_call_operand.vmem [shape: bf16[2,8,32], index: 2, kind: input, shape index: {}]   ;;  %s1305_s3 = inlined_call_operand.vmem [shape: bf16[2,8,32], index: 3, kind: output, shape index: {0}]   ;;  %s1306_s4 = inlined_call_operand.vmem [shape: f32[2,1,4], index: 4, kind: output, shape index: {1}]  }
   0x1   :  { %s1181_s17 = smov 0  }
   0x2 LB: > { %s27_s18 = sadd.s32 1, %s1137_s16  ;;  %p977_p0 = scmp.ge.s32.totalorder %s1141_s17, 1  ;;  %s1141_s17 = sphi %s1181_s17, %s15_s17   ;;  %s1137_s16 = sphi %s1179_s16, %s1308_s16   ;;  %s1133_s15 = sphi %s1177_s15, %s1307_s15  }
   0x3   : > { %p29_p1 = scmp.ge.s32.totalorder %s27_s18, 2  ;;  %p203_p2 = scmp.lt.s32.totalorder %s1141_s17, 3 }
   0x5   : > { %s1310_s18 = smov (%p29_p1, %s27_s18), 0  ;;  %p204_p3 = pnand %p977_p0, %p203_p2 }
   0x6   : > { %p247_p4 = scmp.lt.s32.totalorder (!%p204_p3), %s1133_s15, 1  ;;  %s1146_s26 = smov (!%p204_p3), 120  }
   0x7   : > { %207 = sbr.rel (%p204_p3) target bundleno = 1473 (0x5c1), region = 32  ;;  %s1147_s27 = smov (!%p204_p3), 112  }
   0x8   : > { %s1148_s28 = smov (!%p204_p3), 104   ;;  %s1149_s6 = smov (!%p204_p3), 8  }
   0x9   : > { %s1150_s7 = smov (!%p204_p3), 24   ;;  %s1151_s8 = smov (!%p204_p3), 16  }
   0xc   : > { %v1143_v0 = vmov 0.0   ;;  %vm1144_vm0 = vmmov 0   ;;  %s1312_s15 = smov (!%p247_p4, %s1133_s15), 1  ;;  %vm288_vm1 = vcmask 64512   ;;  %v279_v4 = vlaneseq }
   0xd   : > { %1011 = vmatprep.subr.bf16.mxu0 %v1143_v0  ;;  %1013 = vmatprep.mubr.msk.bf16.mxu0 %vm1144_vm0, %v1143_v0  ;;  %s1204_s19 = sshll.u32 %s1312_s15, 2  ;;  %v1145_v8 = vmov -10000.0   ;;  %vm352_vm3 = vcmask 1043456   ;;  %vm539_vm4 = vcmask 130112   ;;  %vm674_vm10 = vcmask 195712   ;;  %s274_s14 = scalar_lea.vmem %s1306_s4, %s1312_s15 }
   0xe   : > { %1017 = vmatprep.subr.bf16.mxu1 %v1143_v0  ;;  %1019 = vmatprep.mubr.msk.bf16.mxu1 %vm1144_vm0, %v1143_v0  ;;  %s257_s22 = scalar_lea.vmem %s1303_s1, %s1204_s19  ;;  %s253_s25 = scalar_lea.vmem %s1302_s0, %s1204_s19  ;;  %v280_v5 = vshrl.u32 %v279_v4, 7  ;;  %v285_v6 = vand.u32 127, %v279_v4  ;;  %vm809_vm11 = vcmask 261312   ;;  %vm830_vm13 = vcmask 257024  }
   0xf   : > { %v277_v1 = vld [vmem:[%s257_s22] sm:$0xf]  ;;  %s261_s5 = scalar_lea.vmem %s1304_s2, %s1204_s19  ;;  %s268_s11 = scalar_lea.vmem %s1305_s3, %s1204_s19 }
  0x10   : > { %v293_v2 = vsel %vm288_vm1, %v277_v1, 0  ;;  %v276_v3 = vld [vmem:[%s253_s25] sm:$0xf]  ;;  %vm286_vm2 = vcmp.le.s32.totalorder %v285_v6, %v280_v5  ;;  %v985_v16 = vcombine.low %v277_v1, %v277_v1 }
  0x11   : > { %1012 = vmatpush3.bf16.xpose.msra.mxu0 %v293_v2  ;;  %v1219_v9 = vsel %vm286_vm2, 0.0, %v1145_v8  ;;  %v984_v17 = vcombine.low %v276_v3, %v276_v3  ;;  %v1233_v23 = vld [vmem:[%s261_s5] sm:$0xf]  ;;  %vm836_vm2 = vcmask 23552  }
  0x12   : > { %1029 = vmatprep.subr.bf16.mxu0 %v1143_v0  ;;  %422 = vrot.lane.b32.xlu1 %v985_v16, %s1146_s26  ;;  %v354_v24 = vsel %vm352_vm3, %v1233_v23, 0 }
  0x13   : > { %1018 = vmatpush3.bf16.msra.mxu1 %v354_v24 }
  0x14   : > { %1023 = vmatprep.subr.bf16.mxu1 %v1143_v0 }
  0x16   : > { %417 = vrot.lane.b32.xlu1 %v984_v17, %s1146_s26 }
  0x18   : > { %1014 = vmatmul.mubr.msk.bf16.vlgmr.msra.gmra.mxu0 %vm288_vm1, %v276_v3 }
  0x19   : > { %1031 = vmatprep.mubr.msk.bf16.mxu0 %vm1144_vm0, %v1143_v0 }
  0x1a   : > { %558 = vrot.lane.b32.xlu1 %v984_v17, %s1147_s27 }
  0x1e   : > { %695 = vrot.lane.b32.xlu1 %v985_v16, %s1148_s28 }
  0x22   : > { %693 = vrot.lane.b32.xlu1 %v984_v17, %s1148_s28 }
  0x84   : > { %v423_v27 = vpop.permute.xlu1 %422 }
  0x85   : > { %v428_v29 = vsel %vm288_vm1, %v423_v27, 0 }
  0x88   : > { %v418_v31 = vpop.permute.xlu1 %417 }
  0x8c   : > { %v559_v33 = vpop.permute.xlu1 %558 }
  0x90   : > { %v696_v35 = vpop.permute.xlu1 %695 }
  0x91   : > { %v701_v36 = vsel %vm288_vm1, %v696_v35, 0 }
  0x94   : > { %v694_v37 = vpop.permute.xlu1 %693 }
  0xd8   : > { %v329_v7 = vpop.f32.mrf.mxu0 }
  0xd9   : > { %v335_v10 = vmul.f32 0.35355338, %v329_v7 }
  0xda   : > { %v1015_v11 = vpop.f32.mrf.mxu0 }
  0xdb   : > { %v336_v12 = vadd.f32 %v335_v10, %v1219_v9  ;;  %v987_v10 = vcombine.low %v1233_v23, %v1233_v23 }
  0xdc   : > { %v332_v13 = vpop.f32.mrf.mxu0 }
  0xdd   : > { %v337_v14 = vsel %vm288_vm1, %v336_v12, -inf }
  0xde   : > { %338 = vmax.xlane.f32.xlu0 %v337_v14  ;;  %v1016_v15 = vpop.f32.mrf.mxu0 }
 0x167   : > { %v339_v18 = vpop.xlane.xlu0 %338 }
 0x168   : > { %v340_v19 = vsub.f32 %v336_v12, %v339_v18 }
 0x16a   : > { %v341_v20 = vmul.f32 1.442695, %v340_v19 }
 0x16c   : > { %1095 = vpow2.f32 %v341_v20 }
 0x179   : > { %v1096_v21 = vpop.eup %1095 }
 0x17a   : > { %v343_v22 = vsel %vm288_vm1, %v1096_v21, 0.0 }
 0x17b   : > { %344 = vadd.xlane.f32.xlu0 %v343_v22 }
 0x191   : > { %560 = vrot.lane.b32.xlu0 %v985_v16, %s1147_s27 }
 0x204   : > { %v345_v25 = vpop.xlane.xlu0 %344 }
 0x205   : > { %1097 = vrcp.f32 %v345_v25 }
 0x208   : > { %v561_v32 = vpop.permute.xlu0 %560 }
 0x209   : > { %v566_v34 = vsel %vm288_vm1, %v561_v32, 0 }
 0x212   : > { %v1098_v26 = vpop.eup %1097 }
 0x213   : > { %v347_v28 = vmul.f32 %v1098_v26, %v1096_v21 }
 0x215   : > { %v348_v30 = vpack.c.bf16 %v347_v28, %v347_v28 }
 0x217   : > { %1020 = vmatmul.mubr.msk.bf16.vlgmr.msra.gmra.mxu1 %vm288_vm1, %v348_v30 }
 0x218   : > { %1024 = vmatpush3.bf16.xpose.msra.mxu1 %v428_v29  ;;  %1025 = vmatprep.mubr.msk.bf16.mxu1 %vm1144_vm0, %v1143_v0 }
 0x219   : > { %1035 = vmatprep.subr.bf16.mxu1 %v1143_v0 }
 0x21f   : > { %1026 = vmatmul.mubr.msk.bf16.vlgmr.msra.gmra.mxu1 %vm288_vm1, %v418_v31 }
 0x220   : > { %1036 = vmatpush3.bf16.xpose.msra.mxu1 %v566_v34  ;;  %1037 = vmatprep.mubr.msk.bf16.mxu1 %vm1144_vm0, %v1143_v0 }
 0x221   : > { %1047 = vmatprep.subr.bf16.mxu1 %v1143_v0 }
 0x227   : > { %1038 = vmatmul.mubr.msk.bf16.vlgmr.msra.gmra.mxu1 %vm288_vm1, %v559_v33 }
 0x228   : > { %1048 = vmatpush3.bf16.xpose.msra.mxu1 %v701_v36  ;;  %1049 = vmatprep.mubr.msk.bf16.mxu1 %vm1144_vm0, %v1143_v0 }
 0x22f   : > { %1050 = vmatmul.mubr.msk.bf16.vlgmr.msra.gmra.mxu1 %vm288_vm1, %v694_v37 }
 0x2d7   : > { %v390_v38 = vpop.f32.mrf.mxu1 }
 0x2d8   : > { %396 = vst.msk [vmem:[#allocation2] sm:$0xff] %vm288_vm1, %v390_v38  ;;  %v397_v16 = vmul.f32 %v390_v38, %v390_v38 }
 0x2d9   : > { %v1021_v39 = vpop.f32.mrf.mxu1 }
 0x2da   : > { %v398_v17 = vsel %vm288_vm1, %v397_v16, 0.0 }
 0x2db   : > { %v393_v40 = vpop.f32.mrf.mxu1 }
 0x2dd   : > { %v1022_v41 = vpop.f32.mrf.mxu1 }
 0x2df   : > { %v464_v42 = vpop.f32.mrf.mxu1 }
 0x2e0   : > { %v470_v43 = vmul.f32 0.35355338, %v464_v42 }
 0x2e1   : > { %v1027_v44 = vpop.f32.mrf.mxu1 }
 0x2e2   : > { %v471_v45 = vadd.f32 %v470_v43, %v1219_v9 }
 0x2e3   : > { %v467_v46 = vpop.f32.mrf.mxu1 }
 0x2e4   : > { %v472_v47 = vsel %vm288_vm1, %v471_v45, -inf }
 0x2e5   : > { %473 = vmax.xlane.f32.xlu1 %v472_v47  ;;  %v1028_v48 = vpop.f32.mrf.mxu1 }
 0x2e7   : > { %v602_v49 = vpop.f32.mrf.mxu1 }
 0x2e8   : > { %v608_v50 = vmul.f32 0.35355338, %v602_v49 }
 0x2e9   : > { %v1039_v51 = vpop.f32.mrf.mxu1 }
 0x2ea   : > { %v609_v52 = vadd.f32 %v608_v50, %v1219_v9 }
 0x2eb   : > { %v605_v53 = vpop.f32.mrf.mxu1 }
 0x2ec   : > { %v610_v54 = vsel %vm288_vm1, %v609_v52, -inf }
 0x2ed   : > { %611 = vmax.xlane.f32.xlu0 %v610_v54  ;;  %v1040_v55 = vpop.f32.mrf.mxu1 }
 0x2ef   : > { %v737_v56 = vpop.f32.mrf.mxu1 }
 0x2f0   : > { %v743_v57 = vmul.f32 0.35355338, %v737_v56 }
 0x2f1   : > { %v1051_v58 = vpop.f32.mrf.mxu1 }
 0x2f2   : > { %v744_v59 = vadd.f32 %v743_v57, %v1219_v9 }
 0x2f3   : > { %v740_v60 = vpop.f32.mrf.mxu1 }
 0x2f4   : > { %v745_v61 = vsel %vm288_vm1, %v744_v59, -inf }
 0x2f5   : > { %746 = vmax.xlane.f32.xlu1 %v745_v61  ;;  %v1052_v62 = vpop.f32.mrf.mxu1 }
 0x36e   : > { %v474_v63 = vpop.xlane.xlu1 %473 }
 0x36f   : > { %v475_v1 = vsub.f32 %v471_v45, %v474_v63 }
 0x371   : > { %v476_v2 = vmul.f32 1.442695, %v475_v1 }
 0x373   : > { %1099 = vpow2.f32 %v476_v2 }
 0x376   : > { %v612_v3 = vpop.xlane.xlu0 %611 }
 0x377   : > { %v613_v4 = vsub.f32 %v609_v52, %v612_v3 }
 0x379   : > { %v614_v5 = vmul.f32 1.442695, %v613_v4 }
 0x37b   : > { %1101 = vpow2.f32 %v614_v5 }
 0x37e   : > { %v747_v11 = vpop.xlane.xlu1 %746 }
 0x37f   : > { %v748_v12 = vsub.f32 %v744_v59, %v747_v11 }
 0x380   : > { %v1100_v6 = vpop.eup %1099 }
 0x381   : > { %v478_v7 = vsel %vm288_vm1, %v1100_v6, 0.0  ;;  %v749_v13 = vmul.f32 1.442695, %v748_v12 }
 0x382   : > { %479 = vadd.xlane.f32.xlu1 %v478_v7 }
 0x383   : > { %1103 = vpow2.f32 %v749_v13 }
 0x388   : > { %v1102_v8 = vpop.eup %1101 }
 0x389   : > { %v616_v9 = vsel %vm288_vm1, %v1102_v8, 0.0 }
 0x38a   : > { %617 = vadd.xlane.f32.xlu0 %v616_v9 }
 0x390   : > { %v1104_v14 = vpop.eup %1103 }
 0x391   : > { %v751_v15 = vsel %vm288_vm1, %v1104_v14, 0.0 }
 0x393   : > { %622 = vrot.lane.b32.xlu1 %v987_v10, %s1147_s27 }
 0x3a0   : > { %487 = vrot.lane.b32.xlu0 %v987_v10, %s1146_s26 }
 0x3b7   : > { %752 = vadd.xlane.f32.xlu1 %v751_v15 }
 0x3bf   : > { %399 = vadd.xlane.f32.xlu0 %v398_v17 }
 0x3c8   : > { %757 = vrot.lane.b32.xlu1 %v987_v10, %s1148_s28 }
 0x40b   : > { %v480_v18 = vpop.xlane.xlu1 %479 }
 0x40c   : > { %1105 = vrcp.f32 %v480_v18 }
 0x40f   : > { %v623_v24 = vpop.permute.xlu1 %622 }
 0x410   : > { %v628_v26 = vsel %vm352_vm3, %v623_v24, 0 }
 0x413   : > { %v618_v19 = vpop.xlane.xlu0 %617 }
 0x414   : > { %1107 = vrcp.f32 %v618_v19 }
 0x417   : > { %v488_v20 = vpop.permute.xlu0 %487 }
 0x418   : > { %v493_v21 = vsel %vm352_vm3, %v488_v20, 0 }
 0x419   : > { %v1106_v22 = vpop.eup %1105  ;;  %1030 = vmatpush3.bf16.msra.mxu0 %v493_v21 }
 0x41a   : > { %1041 = vmatprep.subr.bf16.mxu0 %v1143_v0  ;;  %v482_v23 = vmul.f32 %v1106_v22, %v1100_v6 }
 0x41c   : > { %v483_v25 = vpack.c.bf16 %v482_v23, %v482_v23 }
 0x41e   : > { %1032 = vmatmul.mubr.msk.bf16.vlgmr.msra.gmra.mxu0 %vm288_vm1, %v483_v25 }
 0x41f   : > { %1042 = vmatpush3.bf16.msra.mxu0 %v628_v26  ;;  %1043 = vmatprep.mubr.msk.bf16.mxu0 %vm1144_vm0, %v1143_v0 }
 0x420   : > { %1053 = vmatprep.subr.bf16.mxu0 %v1143_v0 }
 0x421   : > { %v1108_v27 = vpop.eup %1107 }
 0x422   : > { %v620_v28 = vmul.f32 %v1108_v27, %v1102_v8 }
 0x424   : > { %v621_v29 = vpack.c.bf16 %v620_v28, %v620_v28 }
 0x426   : > { %1044 = vmatmul.mubr.msk.bf16.vlgmr.msra.gmra.mxu0 %vm288_vm1, %v621_v29 }
 0x427   : > { %1055 = vmatprep.mubr.msk.bf16.mxu0 %vm1144_vm0, %v1143_v0  ;;  %vm832_vm0 = vcmask 7168  }
 0x440   : > { %v753_v30 = vpop.xlane.xlu1 %752 }
 0x441   : > { %1109 = vrcp.f32 %v753_v30 }
 0x444   : > { %v758_v31 = vpop.permute.xlu1 %757 }
 0x445   : > { %v763_v32 = vsel %vm352_vm3, %v758_v31, 0  ;;  %vm838_vm3 = vcmask 24576  }
 0x446   : > { %1054 = vmatpush3.bf16.msra.mxu0 %v763_v32 }
 0x448   : > { %v400_v54 = vpop.xlane.xlu0 %399 }
 0x449   : > { %1111 = vrsqrt.f32 %v400_v54  ;;  %vm403_vm6 = vcmp.eq.f32.partialorder %v400_v54, inf  ;;  %v406_v3 = vand.u32 2147483648, %v400_v54  ;;  %vm405_vm8 = vcmp.eq.f32.partialorder %v400_v54, 0.0 }
 0x44e   : > { %v1110_v33 = vpop.eup %1109 }
 0x44f   : > { %v755_v34 = vmul.f32 %v1110_v33, %v1104_v14 }
 0x451   : > { %v756_v35 = vpack.c.bf16 %v755_v34, %v755_v34 }
 0x453   : > { %1056 = vmatmul.mubr.msk.bf16.vlgmr.msra.gmra.mxu0 %vm288_vm1, %v756_v35 }
 0x456   : > { %v1112_v57 = vpop.eup %1111 }
 0x457   : > { %v402_v60 = vmul.f32 %v1112_v57, %v400_v54 }
 0x459   : > { %v404_v2 = vsel %vm403_vm6, %v400_v54, %v402_v60 }
 0x45a   : > { %v407_v6 = vsel %vm405_vm8, %v406_v3, %v404_v2 }
 0x45b   : > { %v408_v11 = vrot.slane %v407_v6, 4 }
 0x45d   : > { %v409_v16 = vadd.f32 %v408_v11, %v407_v6 }
 0x45f   : > { %v410_v19 = vrot.slane %v409_v16, 2 }
 0x461   : > { %v411_v27 = vadd.f32 %v410_v19, %v409_v16 }
 0x463   : > { %v412_v33 = vrot.slane %v411_v27, 1 }
 0x4de   : > { %v529_v36 = vpop.f32.mrf.mxu0 }
 0x4df   : > { %536 = vrot.lane.b32.xlu1 %v529_v36, %s1149_s6  ;;  %v541_v45 = vmul.f32 %v529_v36, %v529_v36 }
 0x4e0   : > { %v1033_v37 = vpop.f32.mrf.mxu0 }
 0x4e1   : > { %v542_v46 = vsel %vm288_vm1, %v541_v45, 0.0 }
 0x4e2   : > { %v532_v38 = vpop.f32.mrf.mxu0 }
 0x4e3   : > { %v413_v38 = vadd.f32 %v412_v33, %v411_v27 }
 0x4e4   : > { %v1034_v39 = vpop.f32.mrf.mxu0 }
 0x4e6   : > { %v664_v40 = vpop.f32.mrf.mxu0 }
 0x4e7   : > { %v676_v41 = vmul.f32 %v664_v40, %v664_v40 }
 0x4e8   : > { %v1045_v0 = vpop.f32.mrf.mxu0 }
 0x4e9   : > { %v677_v42 = vsel %vm288_vm1, %v676_v41, 0.0 }
 0x4ea   : > { %678 = vadd.xlane.f32.xlu0 %v677_v42  ;;  %v667_v43 = vpop.f32.mrf.mxu0 }
 0x4ec   : > { %v1046_v44 = vpop.f32.mrf.mxu0 }
 0x503   : > { %543 = vadd.xlane.f32.xlu1 %v542_v46 }
 0x513   : > { %v799_v47 = vpop.f32.mrf.mxu0 }
 0x514   : > { %v811_v48 = vmul.f32 %v799_v47, %v799_v47  ;;  %806 = vrot.lane.b32.xlu1 %v799_v47, %s1150_s7 }
 0x515   : > { %v1057_v49 = vpop.f32.mrf.mxu0 }
 0x516   : > { %v812_v50 = vsel %vm288_vm1, %v811_v48, 0.0  ;;  %vm834_vm1 = vcmask 15360  }
 0x517   : > { %813 = vadd.xlane.f32.xlu0 %v812_v50  ;;  %v802_v51 = vpop.f32.mrf.mxu0 }
 0x519   : > { %v1058_v52 = vpop.f32.mrf.mxu0 }
 0x52d   : > { %671 = vrot.lane.b32.xlu0 %v664_v40, %s1151_s8 }
 0x551   : > { %v537_v53 = vpop.permute.xlu1 %536 }
 0x552   : > { %540 = vst.msk [vmem:[#allocation2] sm:$0xff] %vm539_vm4, %v537_v53 }
 0x573   : > { %v679_v55 = vpop.xlane.xlu0 %678 }
 0x574   : > { %vm682_vm9 = vcmp.eq.f32.partialorder %v679_v55, inf  ;;  %v685_v8 = vand.u32 2147483648, %v679_v55  ;;  %vm684_vm12 = vcmp.eq.f32.partialorder %v679_v55, 0.0 }
 0x58c   : > { %v544_v56 = vpop.xlane.xlu1 %543 }
 0x58d   : > { %1113 = vrsqrt.f32 %v544_v56  ;;  %vm547_vm5 = vcmp.eq.f32.partialorder %v544_v56, inf  ;;  %v550_v1 = vand.u32 2147483648, %v544_v56  ;;  %vm549_vm7 = vcmp.eq.f32.partialorder %v544_v56, 0.0 }
 0x58e   : > { %1115 = vrsqrt.f32 %v679_v55 }
 0x590   : > { %v807_v13 = vpop.permute.xlu1 %806 }
 0x59a   : > { %v1114_v58 = vpop.eup %1113 }
 0x59b   : > { %v1116_v59 = vpop.eup %1115  ;;  %v546_v61 = vmul.f32 %v1114_v58, %v544_v56 }
 0x59c   : > { %v681_v63 = vmul.f32 %v1116_v59, %v679_v55 }
 0x59d   : > { %v548_v62 = vsel %vm547_vm5, %v544_v56, %v546_v61 }
 0x59e   : > { %v551_v4 = vsel %vm549_vm7, %v550_v1, %v548_v62  ;;  %v683_v7 = vsel %vm682_vm9, %v679_v55, %v681_v63 }
 0x59f   : > { %v552_v9 = vrot.slane %v551_v4, 4  ;;  %v686_v12 = vsel %vm684_vm12, %v685_v8, %v683_v7 }
 0x5a0   : > { %v814_v5 = vpop.xlane.xlu0 %813  ;;  %v687_v15 = vrot.slane %v686_v12, 4 }
 0x5a1   : > { %1117 = vrsqrt.f32 %v814_v5  ;;  %v553_v14 = vadd.f32 %v552_v9, %v551_v4  ;;  %vm817_vm14 = vcmp.eq.f32.partialorder %v814_v5, inf  ;;  %v820_v26 = vand.u32 2147483648, %v814_v5 }
 0x5a2   : > { %v688_v18 = vadd.f32 %v687_v15, %v686_v12  ;;  %vm819_vm15 = vcmp.eq.f32.partialorder %v814_v5, 0.0 }
 0x5a3   : > { %v554_v17 = vrot.slane %v553_v14, 2 }
 0x5a4   : > { %v672_v10 = vpop.permute.xlu0 %671  ;;  %v689_v25 = vrot.slane %v688_v18, 2 }
 0x5a5   : > { %675 = vst.msk [vmem:[#allocation2] sm:$0xff] %vm674_vm10, %v672_v10  ;;  %v555_v23 = vadd.f32 %v554_v17, %v553_v14 }
 0x5a6   : > { %810 = vst.msk [vmem:[#allocation2] sm:$0xff] %vm809_vm11, %v807_v13  ;;  %v690_v32 = vadd.f32 %v689_v25, %v688_v18 }
 0x5a7   : > { %v556_v30 = vrot.slane %v555_v23, 1 }
 0x5a8   : > { %v691_v37 = vrot.slane %v690_v32, 1 }
 0x5a9   : > { %v557_v35 = vadd.f32 %v556_v30, %v555_v23 }
 0x5aa   : > { %v692_v0 = vadd.f32 %v691_v37, %v690_v32 }
 0x5ab   : > { %v833_v40 = vsel %vm832_vm0, %v413_v38, %v557_v35 }
 0x5ac   : > { %v835_v43 = vsel %vm834_vm1, %v833_v40, %v692_v0 }
 0x5ad   : > { %v828_v20 = vld [vmem:[#allocation2] sm:$0xff] }
 0x5ae   : > { %v1118_v21 = vpop.eup %1117  ;;  %v829_v22 = vpack.c.bf16 %v828_v20, %v828_v20 }
 0x5af   : > { %v816_v24 = vmul.f32 %v1118_v21, %v814_v5 }
 0x5b0   : > { %831 = vst.msk [vmem:[%s268_s11] sm:$0xf] %vm830_vm13, %v829_v22 }
 0x5b1   : > { %v818_v28 = vsel %vm817_vm14, %v814_v5, %v816_v24 }
 0x5b2   : > { %v821_v29 = vsel %vm819_vm15, %v820_v26, %v818_v28 }
 0x5b3   : > { %v822_v31 = vrot.slane %v821_v29, 4 }
 0x5b5   : > { %v823_v34 = vadd.f32 %v822_v31, %v821_v29 }
 0x5b7   : > { %v824_v36 = vrot.slane %v823_v34, 2 }
 0x5b9   : > { %v825_v39 = vadd.f32 %v824_v36, %v823_v34 }
 0x5bb   : > { %v826_v41 = vrot.slane %v825_v39, 1 }
 0x5bd   : > { %v827_v42 = vadd.f32 %v826_v41, %v825_v39 }
 0x5bf   : > { %v837_v44 = vsel %vm836_vm2, %v835_v43, %v827_v42 }
 0x5c0   : > { %839 = vst.msk [vmem:[%s274_s14] sm:$0x1] %vm838_vm3, %v837_v44 }
 0x5c1 PF: > { %s15_s17 = sadd.s32 1, %s1141_s17   ;;  %s1307_s15 = smov %s1137_s16 }
 0x5c2   : > { %p12_p5 = scmp.ge.s32.totalorder %s15_s17, 4   ;;  %s1308_s16 = smov %s1310_s18 }
 0x5c4   :  { %14 = sbr.rel (!%p12_p5) target bundleno = 2 (0x2), region = 80 }

// kernel: _lambda_.12
= control target key start
LH: loop header
LB: loop body
LE: loop exit
PB: predicated region body
PF: predicated region fallthrough
CT: control target
= control target key end

     0   :  { %vm35_vm0 = vcmask 261120   ;;  %v395_v15 = vmov 0.0   ;;  %vm396_vm1 = vmmov 0   ;;  %vm87_vm2 = vcmask 257024   ;;  %s512_s0 = inlined_call_operand.vmem [shape: f32[16,32], index: 0, kind: input, shape index: {}]   ;;  %s513_s3 = inlined_call_operand.vmem [shape: bf16[32,128], index: 3, kind: input, shape index: {}]   ;;  %s514_s5 = inlined_call_operand.vmem [shape: bf16[128,32], index: 5, kind: input, shape index: {}]   ;;  %s515_s1 = inlined_call_operand.vmem [shape: f32[1,32], index: 1, kind: input, shape index: {}]   ;;  %s516_s2 = inlined_call_operand.vmem [shape: f32[1,32], index: 2, kind: input, shape index: {}]   ;;  %s517_s4 = inlined_call_operand.vmem [shape: f32[1,128], index: 4, kind: input, shape index: {}]   ;;  %s518_s6 = inlined_call_operand.vmem [shape: f32[1,32], index: 6, kind: input, shape index: {}]   ;;  %s519_s7 = inlined_call_operand.vmem [shape: f32[16,32], index: 7, kind: output, shape index: {}]  }
   0x1   :  { %v440_v0 = vld [vmem:[%s512_s0] sm:$0xff]  ;;  %v445_v1 = vld [vmem:[%s512_s0 + $0x8] sm:$0xff]  ;;  %346 = vmatprep.subr.bf16.mxu0 %v395_v15  ;;  %90 = vst.msk [vmem:[#allocation3] sm:$0xff] %vm35_vm0, %v395_v15  ;;  %91 = vst.msk [vmem:[#allocation3 + $0x8] sm:$0xff] %vm35_vm0, %v395_v15  ;;  %354 = vmatprep.subr.bf16.mxu1 %v395_v15 }
   0x2   :  { %v36_v2 = vsel %vm35_vm0, %v440_v0, 0.0  ;;  %v39_v3 = vsel %vm35_vm0, %v445_v1, 0.0  ;;  %v376_v14 = vld [vmem:[%s513_s3 + $0x8] sm:$0xff]   ;;  %v377_v16 = vld [vmem:[%s513_s3] sm:$0xff]   ;;  %350 = vmatprep.mubr.msk.bf16.mxu0 %vm396_vm1, %v395_v15  ;;  %370 = vmatprep.mubr.msk.bf16.mxu1 %vm396_vm1, %v395_v15  ;;  %v379_v17 = vld [vmem:[%s514_s5 + $0x38] sm:$0xff]  }
   0x3   :  { %37 = vadd.xlane.f32.xlu0 %v36_v2  ;;  %347 = vmatpush3.bf16.msra.mxu0 %v376_v14  ;;  %v314_v25 = vld [vmem:[%s515_s1] ss:$0 sm:$0xff]  ;;  %v380_v37 = vld [vmem:[%s514_s5 + $0x30] sm:$0xff]   ;;  %v381_v38 = vld [vmem:[%s514_s5 + $0x28] sm:$0xff]  }
   0x4   :  { %348 = vmatprep.subr.bf16.mxu0 %v395_v15  ;;  %355 = vmatpush3.bf16.msra.mxu1 %v379_v17  ;;  %v315_v27 = vld [vmem:[%s516_s2] ss:$0 sm:$0xff]  ;;  %v383_v40 = vld [vmem:[%s514_s5 + $0x18] sm:$0xff]   ;;  %v384_v41 = vld [vmem:[%s514_s5 + $0x10] sm:$0xff]  }
   0x5   :  { %356 = vmatprep.subr.bf16.mxu1 %v395_v15  ;;  %v382_v39 = vld [vmem:[%s514_s5 + $0x20] sm:$0xff]   ;;  %v385_v42 = vld [vmem:[%s514_s5 + $0x8] sm:$0xff]  }
   0x6   :  { %v386_v43 = vld [vmem:[%s514_s5] sm:$0xff]  }
   0x7   :  { %40 = vadd.xlane.f32.xlu0 %v39_v3  ;;  %349 = vmatpush3.bf16.msra.mxu0 %v377_v16  ;;  %v318_v44 = vld [vmem:[%s517_s4] ss:$0 sm:$0xff] }
   0x8   :  { %357 = vmatpush3.bf16.msra.mxu1 %v380_v37  ;;  %v178_v62 = vld [vmem:[#allocation3] sm:$0xff] }
   0x9   :  { %358 = vmatprep.subr.bf16.mxu1 %v395_v15 }
   0xc   :  { %359 = vmatpush3.bf16.msra.mxu1 %v381_v38 }
   0xd   :  { %360 = vmatprep.subr.bf16.mxu1 %v395_v15 }
  0x10   :  { %361 = vmatpush3.bf16.msra.mxu1 %v382_v39 }
  0x11   :  { %362 = vmatprep.subr.bf16.mxu1 %v395_v15 }
  0x14   :  { %363 = vmatpush3.bf16.msra.mxu1 %v383_v40 }
  0x15   :  { %364 = vmatprep.subr.bf16.mxu1 %v395_v15 }
  0x18   :  { %365 = vmatpush3.bf16.msra.mxu1 %v384_v41 }
  0x19   :  { %366 = vmatprep.subr.bf16.mxu1 %v395_v15 }
  0x1c   :  { %367 = vmatpush3.bf16.msra.mxu1 %v385_v42 }
  0x1d   :  { %368 = vmatprep.subr.bf16.mxu1 %v395_v15 }
  0x20   :  { %369 = vmatpush3.bf16.msra.mxu1 %v386_v43 }
  0x8c   :  { %v38_v4 = vpop.xlane.xlu0 %37 }
  0x8d   :  { %v43_v5 = vmul.f32 0.03125, %v38_v4  ;;  %v179_v4 = vld [vmem:[#allocation3 + $0x8] sm:$0xff] }
  0x8f   :  { %v45_v6 = vsub.f32 %v440_v0, %v43_v5 }
  0x90   :  { %v41_v7 = vpop.xlane.xlu0 %40 }
  0x91   :  { %v44_v8 = vmul.f32 0.03125, %v41_v7  ;;  %v47_v9 = vmul.f32 %v45_v6, %v45_v6 }
  0x93   :  { %v46_v10 = vsub.f32 %v445_v1, %v44_v8  ;;  %v49_v11 = vsel %vm35_vm0, %v47_v9, 0.0  ;;  %v331_v9 = vld [vmem:[%s518_s6] ss:$0 sm:$0xff] }
  0x94   :  { %50 = vadd.xlane.f32.xlu1 %v49_v11 }
  0x95   :  { %v48_v12 = vmul.f32 %v46_v10, %v46_v10 }
  0x97   :  { %v52_v13 = vsel %vm35_vm0, %v48_v12, 0.0 }
  0x98   :  { %53 = vadd.xlane.f32.xlu1 %v52_v13 }
 0x11d   :  { %v51_v18 = vpop.xlane.xlu1 %50 }
 0x11e   :  { %v55_v19 = vmul.f32 0.03125, %v51_v18 }
 0x120   :  { %v57_v20 = vadd.f32 1e-05, %v55_v19 }
 0x121   :  { %v54_v21 = vpop.xlane.xlu1 %53 }
 0x122   :  { %387 = vrsqrt.f32 %v57_v20  ;;  %v56_v22 = vmul.f32 0.03125, %v54_v21 }
 0x124   :  { %v58_v23 = vadd.f32 1e-05, %v56_v22 }
 0x126   :  { %389 = vrsqrt.f32 %v58_v23 }
 0x12f   :  { %v388_v24 = vpop.eup %387 }
 0x130   :  { %v61_v26 = vmul.f32 %v388_v24, %v45_v6 }
 0x132   :  { %v69_v28 = vmul.f32 %v314_v25, %v61_v26 }
 0x133   :  { %v390_v29 = vpop.eup %389 }
 0x134   :  { %v77_v30 = vadd.f32 %v315_v27, %v69_v28  ;;  %v62_v31 = vmul.f32 %v390_v29, %v46_v10 }
 0x136   :  { %v332_v32 = vpack.c.bf16 %v77_v30, %v77_v30  ;;  %v70_v33 = vmul.f32 %v314_v25, %v62_v31 }
 0x138   :  { %88 = vst.msk [vmem:[#allocation2] sm:$0xf] %vm87_vm2, %v332_v32  ;;  %v78_v34 = vadd.f32 %v315_v27, %v70_v33 }
 0x13a   :  { %v333_v35 = vpack.c.bf16 %v78_v34, %v78_v34 }
 0x13c   :  { %89 = vst.msk [vmem:[#allocation2 + $0x4] sm:$0xf] %vm87_vm2, %v333_v35 }
 0x143   :  { %v378_v36 = vld [vmem:[#allocation2] sm:$0xff]  }
 0x144   :  { %351 = vmatmul.mubr.msk.bf16.vlgmr.msra.gmra.mxu0 %vm35_vm0, %v378_v36 }
 0x204   :  { %v160_v45 = vpop.f32.mrf.mxu0 }
 0x205   :  { %v161_v46 = vadd.f32 %v318_v44, %v160_v45 }
 0x206   :  { %v352_v47 = vpop.f32.mrf.mxu0 }
 0x207   :  { %v170_v48 = vmul.f32 0.70710677, %v161_v46  ;;  %v167_v56 = vmul.f32 0.5, %v161_v46 }
 0x208   :  { %v163_v49 = vpop.f32.mrf.mxu0 }
 0x209   :  { %391 = verf.f32 %v170_v48  ;;  %v164_v50 = vadd.f32 %v318_v44, %v163_v49 }
 0x20a   :  { %v353_v51 = vpop.f32.mrf.mxu0 }
 0x20b   :  { %v171_v52 = vmul.f32 0.70710677, %v164_v50  ;;  %v168_v57 = vmul.f32 0.5, %v164_v50 }
 0x20d   :  { %393 = verf.f32 %v171_v52 }
 0x216   :  { %v392_v53 = vpop.eup %391 }
 0x217   :  { %v174_v54 = vadd.f32 1.0, %v392_v53 }
 0x219   :  { %v176_v59 = vmul.f32 %v174_v54, %v167_v56 }
 0x21a   :  { %v394_v55 = vpop.eup %393 }
 0x21b   :  { %v175_v58 = vadd.f32 1.0, %v394_v55 }
 0x21d   :  { %v177_v60 = vmul.f32 %v175_v58, %v168_v57 }
 0x21f   :  { %v180_v61 = vpack.c.bf16 %v177_v60, %v176_v59 }
 0x221   :  { %371 = vmatmul.mubr.bf16.vlgmr.msra.gmra.mxu1 %v180_v61 }
 0x2e1   :  { %v279_v63 = vpop.f32.mrf.mxu1 }
 0x2e2   :  { %v286_v2 = vadd.f32 %v279_v63, %v178_v62 }
 0x2e3   :  { %v372_v3 = vpop.f32.mrf.mxu1 }
 0x2e4   :  { %288 = vst.msk [vmem:[#allocation3] sm:$0xff] %vm35_vm0, %v286_v2 }
 0x2e5   :  { %v282_v5 = vpop.f32.mrf.mxu1 }
 0x2e6   :  { %v287_v6 = vadd.f32 %v282_v5, %v179_v4 }
 0x2e7   :  { %v373_v7 = vpop.f32.mrf.mxu1 }
 0x2e8   :  { %289 = vst.msk [vmem:[#allocation3 + $0x8] sm:$0xff] %vm35_vm0, %v287_v6 }
 0x2eb   :  { %v295_v8 = vld [vmem:[#allocation3] sm:$0xff] }
 0x2ec   :  { %v297_v10 = vadd.f32 %v295_v8, %v440_v0 }
 0x2ee   :  { %v306_v11 = vadd.f32 %v331_v9, %v297_v10 }
 0x2ef   :  { %v296_v12 = vld [vmem:[#allocation3 + $0x8] sm:$0xff] }
 0x2f0   :  { %308 = vst.msk [vmem:[%s519_s7] sm:$0xff] %vm35_vm0, %v306_v11  ;;  %v298_v13 = vadd.f32 %v296_v12, %v445_v1 }
 0x2f2   :  { %v307_v14 = vadd.f32 %v331_v9, %v298_v13 }
 0x2f4   :  { %309 = vst.msk [vmem:[%s519_s7 + $0x8] sm:$0xff] %vm35_vm0, %v307_v14 }

// kernel: _lambda_.17
= control target key start
LH: loop header
LB: loop body
LE: loop exit
PB: predicated region body
PF: predicated region fallthrough
CT: control target
= control target key end

     0   :  { %vm23_vm0 = vcmask 261120   ;;  %s252_s0 = inlined_call_operand.vmem [shape: f32[16,32], index: 0, kind: input, shape index: {}]   ;;  %s253_s1 = inlined_call_operand.vmem [shape: f32[1,32], index: 1, kind: input, shape index: {}]   ;;  %s254_s2 = inlined_call_operand.vmem [shape: f32[1,32], index: 2, kind: input, shape index: {}]   ;;  %s255_s3 = inlined_call_operand.vmem [shape: bf16[32,64], index: 3, kind: input, shape index: {}]   ;;  %s256_s4 = inlined_call_operand.hbm [shape: f32[16,64], index: 4, kind: output, shape index: {}]  }
   0x1   :  { %v19_v0 = vld [vmem:[%s252_s0] sm:$0xff]  ;;  %v20_v1 = vld [vmem:[%s252_s0 + $0x8] sm:$0xff] }
   0x2   :  { %v24_v2 = vsel %vm23_vm0, %v19_v0, 0.0 }
   0x3   :  { %25 = vadd.xlane.f32.xlu0 %v24_v2 }
   0x4   :  { %9 = vsyncpa [#allocation3], 0  ;;  %v27_v3 = vsel %vm23_vm0, %v20_v1, 0.0  ;;  %v168_v14 = vld [vmem:[%s255_s3 + $0x8] sm:$0xff]   ;;  %v196_v15 = vmov 0.0   ;;  %vm197_vm1 = vmmov 0  }
   0x5   :  { %155 = vmatprep.subr.bf16.mxu0 %v196_v15  ;;  %159 = vmatprep.mubr.msk.bf16.mxu0 %vm197_vm1, %v196_v15  ;;  %v169_v16 = vld [vmem:[%s255_s3] sm:$0xff]   ;;  %vm128_vm2 = vcmask 523264   ;;  %s198_s25 = smov [#allocation2]  }
   0x6   :  { %156 = vmatpush3.bf16.msra.mxu0 %v168_v14  ;;  %v147_v25 = vld [vmem:[%s253_s1] ss:$0 sm:$0xff]  ;;  %s136_s26 = sshll.u32 %s198_s25, 4  ;;  %s137_s26 = int_to_ptr.vmem [resolvable:$true] %s136_s26 }
   0x7   :  { %28 = vadd.xlane.f32.xlu0 %v27_v3  ;;  %157 = vmatprep.subr.bf16.mxu0 %v196_v15  ;;  %v148_v29 = vld [vmem:[%s254_s2] ss:$0 sm:$0xff]  ;;  %s174_s1 = scalar_lea.vmem %s137_s26, 256  ;;  %p179_p1 = scmp.lt.s32.totalorder %s137_s26, %s137_s26 }
   0x8   :  { %p175_p0 = scmp.ne.s32.totalorder %s137_s26, %s174_s1  ;;  %p180_p2 = scmp.lt.s32.totalorder %s174_s1, %s174_s1 }
   0xa   :  { %158 = vmatpush3.bf16.msra.mxu0 %v169_v16  ;;  %p181_p3 = por %p180_p2, %p179_p1 }
   0xc   :  { %p182_p4 = pnand %p181_p3, %p175_p0 }
  0x8c   :  { %v26_v4 = vpop.xlane.xlu0 %25 }
  0x8d   :  { %v31_v5 = vmul.f32 0.03125, %v26_v4 }
  0x8f   :  { %v33_v6 = vsub.f32 %v19_v0, %v31_v5 }
  0x90   :  { %v29_v7 = vpop.xlane.xlu0 %28 }
  0x91   :  { %v32_v8 = vmul.f32 0.03125, %v29_v7  ;;  %v35_v9 = vmul.f32 %v33_v6, %v33_v6 }
  0x93   :  { %v34_v10 = vsub.f32 %v20_v1, %v32_v8  ;;  %v37_v11 = vsel %vm23_vm0, %v35_v9, 0.0 }
  0x94   :  { %38 = vadd.xlane.f32.xlu1 %v37_v11 }
  0x95   :  { %v36_v12 = vmul.f32 %v34_v10, %v34_v10 }
  0x97   :  { %v40_v13 = vsel %vm23_vm0, %v36_v12, 0.0 }
  0x98   :  { %41 = vadd.xlane.f32.xlu1 %v40_v13 }
 0x11d   :  { %v39_v17 = vpop.xlane.xlu1 %38 }
 0x11e   :  { %v43_v18 = vmul.f32 0.03125, %v39_v17 }
 0x120   :  { %v45_v19 = vadd.f32 1e-05, %v43_v18 }
 0x121   :  { %v42_v20 = vpop.xlane.xlu1 %41 }
 0x122   :  { %170 = vrsqrt.f32 %v45_v19  ;;  %v44_v21 = vmul.f32 0.03125, %v42_v20 }
 0x124   :  { %v46_v22 = vadd.f32 1e-05, %v44_v21 }
 0x126   :  { %172 = vrsqrt.f32 %v46_v22 }
 0x12f   :  { %v171_v23 = vpop.eup %170 }
 0x130   :  { %v49_v24 = vmul.f32 %v171_v23, %v33_v6 }
 0x132   :  { %v57_v28 = vmul.f32 %v147_v25, %v49_v24 }
 0x133   :  { %v173_v26 = vpop.eup %172 }
 0x134   :  { %v50_v27 = vmul.f32 %v173_v26, %v34_v10  ;;  %v65_v31 = vadd.f32 %v148_v29, %v57_v28 }
 0x136   :  { %v58_v30 = vmul.f32 %v147_v25, %v50_v27 }
 0x138   :  { %v66_v32 = vadd.f32 %v148_v29, %v58_v30 }
 0x13a   :  { %v67_v33 = vpack.c.bf16 %v66_v32, %v65_v31 }
 0x13c   :  { %160 = vmatmul.mubr.msk.bf16.vlgmr.msra.gmra.mxu0 %vm23_vm0, %v67_v33 }
 0x1fc   :  { %v121_v34 = vpop.f32.mrf.mxu0 }
 0x1fd   :  { %129 = vst.msk [vmem:[#allocation2] sm:$0xff] %vm128_vm2, %v121_v34 }
 0x1fe   :  { %v161_v35 = vpop.f32.mrf.mxu0 }
 0x200   :  { %v124_v36 = vpop.f32.mrf.mxu0 }
 0x201   :  { %130 = vst.msk [vmem:[#allocation2 + $0x8] sm:$0xff] %vm128_vm2, %v124_v36 }
 0x202   :  { %v162_v37 = vpop.f32.mrf.mxu0 }
 0x203   :  { %185 = shalt.err (!%p182_p4)
}
 0x204   :  { %s199_s2 = smov 128   ;;  %s200_s27 = smov 8  }
 0x205   :  { %142 = dma.vmem_to_hbm [thread:$0]  %s137_s26, 256, %s256_s4, [#allocation3], %s199_s2, %s199_s2, %s200_s27  }
 0x206   :  { %194 = dma.done.wait [#allocation3], 256  }
 0x207   :  { %195 = vsyncadd [#allocation3], 4294967040 }
 0x208   :  { %146 = vsyncpa [#allocation3], 1 }

</bundles_post_ra>
